<compile_context>
chip_gen: v5e
topology: v5e:2x2
jax: 0.10.0
libtpu: 0.0.40
codegen_flags: <defaults>
</compile_context>

<pallas_src>
import jax
import jax.numpy as jnp
from jax import lax
from jax.experimental import pallas as pl
from jax.experimental.pallas import tpu as pltpu


_VMEM = pl.BlockSpec(memory_space=pltpu.MemorySpace.VMEM)
_SMEM = pl.BlockSpec(memory_space=pltpu.MemorySpace.SMEM)


# ----------------------------------------------------------------------------
# Pallas kernels
# ----------------------------------------------------------------------------
def _conv_gemm_kernel(w_ref, p_ref, b_ref, o_ref):
    """o = relu(W @ P + b).  W:(Co,K)  P:(K,M)  b:(Co,1)  ->  o:(Co,M) lane-dense."""
    y = jnp.dot(w_ref[...], p_ref[...], preferred_element_type=jnp.float32)
    o_ref[...] = jnp.maximum(y + b_ref[...], 0.0)


def conv_gemm_relu(wmat, patches, bcol):
    Co, K = wmat.shape
    K2, M = patches.shape
    assert K == K2
    return pl.pallas_call(
        _conv_gemm_kernel,
        out_shape=jax.ShapeDtypeStruct((Co, M), jnp.float32),
        in_specs=[_VMEM, _VMEM, _VMEM],
        out_specs=_VMEM,
    )(wmat, patches, bcol)


def _tail_kernel(p3_ref, w3_ref, b3_ref, spt_ref,
                 f1w_ref, f1b_ref, f2w_ref, f2b_ref, f3w_ref, f3b_ref,
                 g1aw_ref, g1bw_ref, g1b_ref, g2w_ref, g2b_ref, g3w_ref, g3b_ref,
                 w4_ref, b4_ref, alpha_ref, o_ref):
    """conv3 GEMM+ReLU + conv4 + sigmoid + maxpool(2,2) + fc_1 + cat + fc_2."""
    f32 = jnp.float32

    # conv3: relu((4,784) @ (784,64) + b).  Output lane l = 8*h + w (8x8 image).
    y3 = jnp.dot(w3_ref[...], p3_ref[...], preferred_element_type=f32)
    y3 = jnp.maximum(y3 + b3_ref[...], 0.0)                          # (4, 64)

    # conv4 (3x3, stride 1, valid) in the flat 8-wide lane space:
    #   y4[l] = b4 + sum_{c,i,j} W4[c,i,j] * y3[c, l + 8*i + j]
    # valid at l = 8*h' + w', h',w' in 0..5  (max l = 45 -> keep 46 lanes).
    NV = 46
    acc = jnp.zeros((1, NV), f32) + b4_ref[0]
    for c in range(4):
        for i in range(3):
            for j in range(3):
                d = 8 * i + j
                acc = acc + w4_ref[c * 9 + i * 3 + j] * y3[c:c + 1, d:d + NV]
    y4 = jax.nn.sigmoid(acc)                                         # (1, 46)

    # MaxPool2d(2,2): pooled (ph,pw) sits at base lane 16*ph + 2*pw (max 36);
    # max over lane offsets {0, 1, 8, 9}.
    NP = 37
    m = jnp.maximum(jnp.maximum(y4[:, 0:NP], y4[:, 1:1 + NP]),
                    jnp.maximum(y4[:, 8:8 + NP], y4[:, 9:9 + NP]))   # (1, 37)
    # The gather of the 9 valid pooled lanes (flatten order 3*ph + pw) is folded
    # into g1aw (37,18) at prep time -> no in-kernel gather needed.

    # PReLU alphas (one scalar per module), hoisted once from SMEM.
    a0 = alpha_ref[0]
    a1 = alpha_ref[1]
    a2 = alpha_ref[2]
    a3 = alpha_ref[3]

    # fc_1: 5 -> 10 -> 10 -> 9
    s = spt_ref[...]                                                 # (1, 5)
    s = jnp.dot(s, f1w_ref[...], preferred_element_type=f32) + f1b_ref[...]
    s = jnp.where(s > 0.0, s, a0 * s)
    s = jnp.dot(s, f2w_ref[...], preferred_element_type=f32) + f2b_ref[...]
    s = jnp.where(s > 0.0, s, a1 * s)
    s = jax.nn.sigmoid(
        jnp.dot(s, f3w_ref[...], preferred_element_type=f32) + f3b_ref[...])   # (1, 9)

    # fc_2 on cat(img, spt): the concat is a split matmul (img branch uses the
    # pool-gather-expanded weights g1aw).
    h = (jnp.dot(m, g1aw_ref[...], preferred_element_type=f32)
         + jnp.dot(s, g1bw_ref[...], preferred_element_type=f32)
         + g1b_ref[...])
    h = jnp.where(h > 0.0, h, a2 * h)
    h = jnp.dot(h, g2w_ref[...], preferred_element_type=f32) + g2b_ref[...]
    h = jnp.where(h > 0.0, h, a3 * h)
    o_ref[...] = jax.nn.sigmoid(
        jnp.dot(h, g3w_ref[...], preferred_element_type=f32) + g3b_ref[...])


def tail_fused(p3, spt_row, q):
    out_dim = q["g3w"].shape[1]
    args = (p3, q["c3w"], q["c3b"], spt_row,
            q["f1w"], q["f1b"], q["f2w"], q["f2b"], q["f3w"], q["f3b"],
            q["g1aw"], q["g1bw"], q["g1b"], q["g2w"], q["g2b"], q["g3w"], q["g3b"],
            q["c4w"], q["c4b"], q["alpha"])
    return pl.pallas_call(
        _tail_kernel,
        out_shape=jax.ShapeDtypeStruct((1, out_dim), jnp.float32),
        in_specs=[_VMEM] * 17 + [_SMEM] * 3,
        out_specs=_VMEM,
    )(*args)


# ----------------------------------------------------------------------------
# Plain-JAX glue: im2col via ONE grouped identity conv per layer (no MACs on
# real weights here; just data plumbing as a single XLA op).
# ----------------------------------------------------------------------------
def _patch_id_kernel(C, k):
    """(C*k*k, 1, k, k) one-hot kernel: grouped conv with it extracts im2col
    patches with row order (c, i, j) -- matching W.reshape(Co, C*k*k)."""
    eye = jnp.eye(k * k, dtype=jnp.float32).reshape(k * k, 1, k, k)
    return jnp.tile(eye, (C, 1, 1, 1))


def extract_patches(x, pk, stride, pad):
    """x: (1, C, H, W) -> (C*k*k, Ho*Wo) patch matrix, columns row-major (ho, wo)."""
    C = x.shape[1]
    p = lax.conv_general_dilated(
        x, pk, window_strides=(stride, stride),
        padding=[(pad, pad), (pad, pad)],
        dimension_numbers=("NCHW", "OIHW", "NCHW"),
        feature_group_count=C)
    _, K, Ho, Wo = p.shape
    return p.reshape(K, Ho * Wo)


# ----------------------------------------------------------------------------
# Parameters (deterministic init mimicking PyTorch defaults)
# ----------------------------------------------------------------------------
def init_params(key, in_dim, out_dim):
    keys = iter(jax.random.split(key, 32))

    def conv_p(co, ci, kk):
        k1, k2 = next(keys), next(keys)
        bound = 1.0 / float(ci * kk * kk) ** 0.5
        w = jax.random.uniform(k1, (co, ci, kk, kk), jnp.float32, -bound, bound)
        b = jax.random.uniform(k2, (co,), jnp.float32, -bound, bound)
        return w, b

    def lin_p(out_f, in_f):
        k1, k2 = next(keys), next(keys)
        bound = 1.0 / float(in_f) ** 0.5
        w = jax.random.uniform(k1, (out_f, in_f), jnp.float32, -bound, bound)
        b = jax.random.uniform(k2, (out_f,), jnp.float32, -bound, bound)
        return w, b

    p = {}
    p["c1w"], p["c1b"] = conv_p(6, in_dim, 3)
    p["c2w"], p["c2b"] = conv_p(16, 6, 5)
    p["c3w"], p["c3b"] = conv_p(4, 16, 7)
    p["c4w"], p["c4b"] = conv_p(1, 4, 3)
    p["f1w"], p["f1b"] = lin_p(10, 5)
    p["f2w"], p["f2b"] = lin_p(10, 10)
    p["f3w"], p["f3b"] = lin_p(9, 10)
    p["g1w"], p["g1b"] = lin_p(18, 18)
    p["g2w"], p["g2b"] = lin_p(18, 18)
    p["g3w"], p["g3b"] = lin_p(out_dim, 18)
    # PReLU: one learnable alpha per module (PyTorch default init 0.25).
    p["alpha"] = jnp.full((4,), 0.25, jnp.float32)
    return p


def prep_params(p):
    """One-time weight reshapes / expansions, kept out of the jitted hot path."""
    q = {}
    for n in ("c1", "c2", "c3"):
        q[n + "w"] = p[n + "w"].reshape(p[n + "w"].shape[0], -1)   # (Co, Ci*k*k)
        q[n + "b"] = p[n + "b"].reshape(-1, 1)                     # (Co, 1)
    q["c4w"] = p["c4w"].reshape(-1)                                # (36,) order (c,i,j)
    q["c4b"] = p["c4b"].reshape(-1)                                # (1,)
    for n in ("f1", "f2", "f3", "g2", "g3"):
        q[n + "w"] = p[n + "w"].T                                  # (in, out)
        q[n + "b"] = p[n + "b"].reshape(1, -1)
    # fc_2 first layer on cat(img(9), spt(9)): rows 0..8 are the img branch.
    g1t = p["g1w"].T                                               # (18, 18)
    q["g1bw"] = g1t[9:]                                            # (9, 18) spt branch
    # Image branch: fold the gather of the 9 valid pooled lanes into the weights.
    # Pooled (ph,pw) sits at lane 16*ph + 2*pw of the kernel's (1,37) pool vector
    # and at flat index 3*ph + pw of torch's img_out.view(-1).
    g1a = jnp.zeros((37, 18), jnp.float32)
    for ph in range(3):
        for pw in range(3):
            g1a = g1a.at[16 * ph + 2 * pw].set(g1t[3 * ph + pw])
    q["g1aw"] = g1a
    q["g1b"] = p["g1b"].reshape(1, -1)
    q["alpha"] = p["alpha"]
    # One-hot patch-extraction kernels (one XLA conv op of glue per layer).
    q["pk1"] = _patch_id_kernel(p["c1w"].shape[1], 3)
    q["pk2"] = _patch_id_kernel(6, 5)
    q["pk3"] = _patch_id_kernel(16, 7)
    return q


# ----------------------------------------------------------------------------
# Full forward pass (mirrors comn_01.forward)
# ----------------------------------------------------------------------------
def comn_01_forward(q, img, spt):
    # img: (1, in_dim, 68, 68) NCHW, spt: (5,)
    p1 = extract_patches(img, q["pk1"], stride=1, pad=1)            # (27, 4624)
    y1 = conv_gemm_relu(q["c1w"], p1, q["c1b"])                     # (6, 4624)

    p2 = extract_patches(y1.reshape(1, 6, 68, 68), q["pk2"], stride=3, pad=0)
    y2 = conv_gemm_relu(q["c2w"], p2, q["c2b"])                     # (16, 484)

    p3 = extract_patches(y2.reshape(1, 16, 22, 22), q["pk3"], stride=3, pad=3)
    # conv3 + conv4 + sigmoid + maxpool + fc_1 + cat + fc_2: one fused kernel.
    out = tail_fused(p3, spt.reshape(1, -1), q)                     # (1, out_dim)
    return out.reshape(-1)


if __name__ == "__main__":
    in_dim, out_dim = 3, 4
    key = jax.random.PRNGKey(0)
    k_img, k_spt, k_par = jax.random.split(key, 3)

    # 68x68 spatial size is forced by the module: the conv stack + pool must
    # flatten to 9 elements so cat(img_out, fc_1(spt)) has width 18.
    img = jax.random.normal(k_img, (1, in_dim, 68, 68), jnp.float32)
    spt = jax.random.normal(k_spt, (5,), jnp.float32)
    q = prep_params(init_params(k_par, in_dim, out_dim))

    fwd = jax.jit(comn_01_forward)
    out = jax.block_until_ready(fwd(q, img, spt))
    assert out.shape == (out_dim,)
    assert bool(jnp.all(jnp.isfinite(out)))
    print("KERNEL_OK")
</pallas_src>

<mosaic_0001>
module attributes {stable_mosaic.version = 11 : i64} {
  func.func @_conv_gemm_kernel(%arg0: memref<6x27xf32, #tpu.memory_space<vmem>>, %arg1: memref<27x4624xf32, #tpu.memory_space<vmem>>, %arg2: memref<6x1xf32, #tpu.memory_space<vmem>>, %arg3: memref<6x4624xf32, #tpu.memory_space<vmem>>) attributes {dimension_semantics = [], scalar_prefetch = 0 : i64, scratch_operands = 0 : i64, tpu.core_type = #tpu.core_type<tc>} {
    %c0 = arith.constant 0 : index
    %c0_0 = arith.constant 0 : index
    %0 = vector.load %arg0[%c0, %c0_0] : memref<6x27xf32, #tpu.memory_space<vmem>>, vector<6x27xf32>
    %c0_1 = arith.constant 0 : index
    %c0_2 = arith.constant 0 : index
    %1 = vector.load %arg1[%c0_1, %c0_2] : memref<27x4624xf32, #tpu.memory_space<vmem>>, vector<27x4624xf32>
    %cst = arith.constant dense<0.000000e+00> : vector<6x4624xf32>
    %2 = tpu.matmul %0, %1, %cst {dimension_numbers = #tpu.dot_dimension_numbers<[1], [0], [0], [1], [0, 0, 1, 1], [], []>} : vector<6x27xf32>, vector<27x4624xf32>, vector<6x4624xf32> -> vector<6x4624xf32>
    %c0_3 = arith.constant 0 : index
    %c0_4 = arith.constant 0 : index
    %3 = vector.load %arg2[%c0_3, %c0_4] : memref<6x1xf32, #tpu.memory_space<vmem>>, vector<6x1xf32>
    %4 = vector.broadcast %3 : vector<6x1xf32> to vector<6x4624xf32>
    %5 = arith.addf %2, %4 : vector<6x4624xf32>
    %cst_5 = arith.constant 0.000000e+00 : f32
    %6 = vector.broadcast %cst_5 : f32 to vector<6x4624xf32>
    %7 = arith.maximumf %5, %6 : vector<6x4624xf32>
    %c0_6 = arith.constant 0 : index
    %c0_7 = arith.constant 0 : index
    %8 = vector.load %arg3[%c0_6, %c0_7] : memref<6x4624xf32, #tpu.memory_space<vmem>>, vector<6x4624xf32>
    tpu.vector_store %arg3[%c0_6, %c0_7], %7 {strides = array<i32>} : memref<6x4624xf32, #tpu.memory_space<vmem>>, vector<6x4624xf32>,
    return
  }
}

module attributes {stable_mosaic.version = 11 : i64} {
  func.func @_conv_gemm_kernel(%arg0: memref<16x150xf32, #tpu.memory_space<vmem>>, %arg1: memref<150x484xf32, #tpu.memory_space<vmem>>, %arg2: memref<16x1xf32, #tpu.memory_space<vmem>>, %arg3: memref<16x484xf32, #tpu.memory_space<vmem>>) attributes {dimension_semantics = [], scalar_prefetch = 0 : i64, scratch_operands = 0 : i64, tpu.core_type = #tpu.core_type<tc>} {
    %c0 = arith.constant 0 : index
    %c0_0 = arith.constant 0 : index
    %0 = vector.load %arg0[%c0, %c0_0] : memref<16x150xf32, #tpu.memory_space<vmem>>, vector<16x150xf32>
    %c0_1 = arith.constant 0 : index
    %c0_2 = arith.constant 0 : index
    %1 = vector.load %arg1[%c0_1, %c0_2] : memref<150x484xf32, #tpu.memory_space<vmem>>, vector<150x484xf32>
    %cst = arith.constant dense<0.000000e+00> : vector<16x484xf32>
    %2 = tpu.matmul %0, %1, %cst {dimension_numbers = #tpu.dot_dimension_numbers<[1], [0], [0], [1], [0, 0, 1, 1], [], []>} : vector<16x150xf32>, vector<150x484xf32>, vector<16x484xf32> -> vector<16x484xf32>
    %c0_3 = arith.constant 0 : index
    %c0_4 = arith.constant 0 : index
    %3 = vector.load %arg2[%c0_3, %c0_4] : memref<16x1xf32, #tpu.memory_space<vmem>>, vector<16x1xf32>
    %4 = vector.broadcast %3 : vector<16x1xf32> to vector<16x484xf32>
    %5 = arith.addf %2, %4 : vector<16x484xf32>
    %cst_5 = arith.constant 0.000000e+00 : f32
    %6 = vector.broadcast %cst_5 : f32 to vector<16x484xf32>
    %7 = arith.maximumf %5, %6 : vector<16x484xf32>
    %c0_6 = arith.constant 0 : index
    %c0_7 = arith.constant 0 : index
    %8 = vector.load %arg3[%c0_6, %c0_7] : memref<16x484xf32, #tpu.memory_space<vmem>>, vector<16x484xf32>
    tpu.vector_store %arg3[%c0_6, %c0_7], %7 {strides = array<i32>} : memref<16x484xf32, #tpu.memory_space<vmem>>, vector<16x484xf32>,
    return
  }
}

module attributes {stable_mosaic.version = 11 : i64} {
  func.func @_tail_kernel(%arg0: memref<784x64xf32, #tpu.memory_space<vmem>>, %arg1: memref<4x784xf32, #tpu.memory_space<vmem>>, %arg2: memref<4x1xf32, #tpu.memory_space<vmem>>, %arg3: memref<1x5xf32, #tpu.memory_space<vmem>>, %arg4: memref<5x10xf32, #tpu.memory_space<vmem>>, %arg5: memref<1x10xf32, #tpu.memory_space<vmem>>, %arg6: memref<10x10xf32, #tpu.memory_space<vmem>>, %arg7: memref<1x10xf32, #tpu.memory_space<vmem>>, %arg8: memref<10x9xf32, #tpu.memory_space<vmem>>, %arg9: memref<1x9xf32, #tpu.memory_space<vmem>>, %arg10: memref<37x18xf32, #tpu.memory_space<vmem>>, %arg11: memref<9x18xf32, #tpu.memory_space<vmem>>, %arg12: memref<1x18xf32, #tpu.memory_space<vmem>>, %arg13: memref<18x18xf32, #tpu.memory_space<vmem>>, %arg14: memref<1x18xf32, #tpu.memory_space<vmem>>, %arg15: memref<18x4xf32, #tpu.memory_space<vmem>>, %arg16: memref<1x4xf32, #tpu.memory_space<vmem>>, %arg17: memref<36xf32, #tpu.memory_space<smem>>, %arg18: memref<1xf32, #tpu.memory_space<smem>>, %arg19: memref<4xf32, #tpu.memory_space<smem>>, %arg20: memref<1x4xf32, #tpu.memory_space<vmem>>) attributes {dimension_semantics = [], scalar_prefetch = 0 : i64, scratch_operands = 0 : i64, tpu.core_type = #tpu.core_type<tc>} {
    %c0 = arith.constant 0 : index
    %c0_0 = arith.constant 0 : index
    %0 = vector.load %arg1[%c0, %c0_0] : memref<4x784xf32, #tpu.memory_space<vmem>>, vector<4x784xf32>
    %c0_1 = arith.constant 0 : index
    %c0_2 = arith.constant 0 : index
    %1 = vector.load %arg0[%c0_1, %c0_2] : memref<784x64xf32, #tpu.memory_space<vmem>>, vector<784x64xf32>
    %cst = arith.constant dense<0.000000e+00> : vector<4x64xf32>
    %2 = tpu.matmul %0, %1, %cst {dimension_numbers = #tpu.dot_dimension_numbers<[1], [0], [0], [1], [0, 0, 1, 1], [], []>} : vector<4x784xf32>, vector<784x64xf32>, vector<4x64xf32> -> vector<4x64xf32>
    %c0_3 = arith.constant 0 : index
    %c0_4 = arith.constant 0 : index
    %3 = vector.load %arg2[%c0_3, %c0_4] : memref<4x1xf32, #tpu.memory_space<vmem>>, vector<4x1xf32>
    %4 = vector.broadcast %3 : vector<4x1xf32> to vector<4x64xf32>
    %5 = arith.addf %2, %4 : vector<4x64xf32>
    %cst_5 = arith.constant 0.000000e+00 : f32
    %6 = vector.broadcast %cst_5 : f32 to vector<4x64xf32>
    %7 = arith.maximumf %5, %6 : vector<4x64xf32>
    %cst_6 = arith.constant 0.000000e+00 : f32
    %8 = vector.broadcast %cst_6 : f32 to vector<1x46xf32>
    %c0_7 = arith.constant 0 : index
    %9 = memref.load %arg18[%c0_7] : memref<1xf32, #tpu.memory_space<smem>>
    %10 = vector.broadcast %9 : f32 to vector<1x46xf32>
    %11 = arith.addf %8, %10 : vector<1x46xf32>
    %c0_8 = arith.constant 0 : index
    %12 = memref.load %arg17[%c0_8] : memref<36xf32, #tpu.memory_space<smem>>
    %13 = vector.extract_strided_slice %7 {offsets = [0, 0], sizes = [1, 46], strides = [1, 1]} : vector<4x64xf32> to vector<1x46xf32>
    %14 = vector.broadcast %12 : f32 to vector<1x46xf32>
    %15 = arith.mulf %14, %13 : vector<1x46xf32>
    %16 = arith.addf %11, %15 : vector<1x46xf32>
    %c1 = arith.constant 1 : index
    %17 = memref.load %arg17[%c1] : memref<36xf32, #tpu.memory_space<smem>>
    %18 = vector.extract_strided_slice %7 {offsets = [0, 1], sizes = [1, 46], strides = [1, 1]} : vector<4x64xf32> to vector<1x46xf32>
    %19 = vector.broadcast %17 : f32 to vector<1x46xf32>
    %20 = arith.mulf %19, %18 : vector<1x46xf32>
    %21 = arith.addf %16, %20 : vector<1x46xf32>
    %c2 = arith.constant 2 : index
    %22 = memref.load %arg17[%c2] : memref<36xf32, #tpu.memory_space<smem>>
    %23 = vector.extract_strided_slice %7 {offsets = [0, 2], sizes = [1, 46], strides = [1, 1]} : vector<4x64xf32> to vector<1x46xf32>
    %24 = vector.broadcast %22 : f32 to vector<1x46xf32>
    %25 = arith.mulf %24, %23 : vector<1x46xf32>
    %26 = arith.addf %21, %25 : vector<1x46xf32>
    %c3 = arith.constant 3 : index
    %27 = memref.load %arg17[%c3] : memref<36xf32, #tpu.memory_space<smem>>
    %28 = vector.extract_strided_slice %7 {offsets = [0, 8], sizes = [1, 46], strides = [1, 1]} : vector<4x64xf32> to vector<1x46xf32>
    %29 = vector.broadcast %27 : f32 to vector<1x46xf32>
    %30 = arith.mulf %29, %28 : vector<1x46xf32>
    %31 = arith.addf %26, %30 : vector<1x46xf32>
    %c4 = arith.constant 4 : index
    %32 = memref.load %arg17[%c4] : memref<36xf32, #tpu.memory_space<smem>>
    %33 = vector.extract_strided_slice %7 {offsets = [0, 9], sizes = [1, 46], strides = [1, 1]} : vector<4x64xf32> to vector<1x46xf32>
    %34 = vector.broadcast %32 : f32 to vector<1x46xf32>
    %35 = arith.mulf %34, %33 : vector<1x46xf32>
    %36 = arith.addf %31, %35 : vector<1x46xf32>
    %c5 = arith.constant 5 : index
    %37 = memref.load %arg17[%c5] : memref<36xf32, #tpu.memory_space<smem>>
    %38 = vector.extract_strided_slice %7 {offsets = [0, 10], sizes = [1, 46], strides = [1, 1]} : vector<4x64xf32> to vector<1x46xf32>
    %39 = vector.broadcast %37 : f32 to vector<1x46xf32>
    %40 = arith.mulf %39, %38 : vector<1x46xf32>
    %41 = arith.addf %36, %40 : vector<1x46xf32>
    %c6 = arith.constant 6 : index
    %42 = memref.load %arg17[%c6] : memref<36xf32, #tpu.memory_space<smem>>
    %43 = vector.extract_strided_slice %7 {offsets = [0, 16], sizes = [1, 46], strides = [1, 1]} : vector<4x64xf32> to vector<1x46xf32>
    %44 = vector.broadcast %42 : f32 to vector<1x46xf32>
    %45 = arith.mulf %44, %43 : vector<1x46xf32>
    %46 = arith.addf %41, %45 : vector<1x46xf32>
    %c7 = arith.constant 7 : index
    %47 = memref.load %arg17[%c7] : memref<36xf32, #tpu.memory_space<smem>>
    %48 = vector.extract_strided_slice %7 {offsets = [0, 17], sizes = [1, 46], strides = [1, 1]} : vector<4x64xf32> to vector<1x46xf32>
    %49 = vector.broadcast %47 : f32 to vector<1x46xf32>
    %50 = arith.mulf %49, %48 : vector<1x46xf32>
    %51 = arith.addf %46, %50 : vector<1x46xf32>
    %c8 = arith.constant 8 : index
    %52 = memref.load %arg17[%c8] : memref<36xf32, #tpu.memory_space<smem>>
    %53 = vector.extract_strided_slice %7 {offsets = [0, 18], sizes = [1, 46], strides = [1, 1]} : vector<4x64xf32> to vector<1x46xf32>
    %54 = vector.broadcast %52 : f32 to vector<1x46xf32>
    %55 = arith.mulf %54, %53 : vector<1x46xf32>
    %56 = arith.addf %51, %55 : vector<1x46xf32>
    %c9 = arith.constant 9 : index
    %57 = memref.load %arg17[%c9] : memref<36xf32, #tpu.memory_space<smem>>
    %58 = vector.extract_strided_slice %7 {offsets = [1, 0], sizes = [1, 46], strides = [1, 1]} : vector<4x64xf32> to vector<1x46xf32>
    %59 = vector.broadcast %57 : f32 to vector<1x46xf32>
    %60 = arith.mulf %59, %58 : vector<1x46xf32>
    %61 = arith.addf %56, %60 : vector<1x46xf32>
    %c10 = arith.constant 10 : index
    %62 = memref.load %arg17[%c10] : memref<36xf32, #tpu.memory_space<smem>>
    %63 = vector.extract_strided_slice %7 {offsets = [1, 1], sizes = [1, 46], strides = [1, 1]} : vector<4x64xf32> to vector<1x46xf32>
    %64 = vector.broadcast %62 : f32 to vector<1x46xf32>
    %65 = arith.mulf %64, %63 : vector<1x46xf32>
    %66 = arith.addf %61, %65 : vector<1x46xf32>
    %c11 = arith.constant 11 : index
    %67 = memref.load %arg17[%c11] : memref<36xf32, #tpu.memory_space<smem>>
    %68 = vector.extract_strided_slice %7 {offsets = [1, 2], sizes = [1, 46], strides = [1, 1]} : vector<4x64xf32> to vector<1x46xf32>
    %69 = vector.broadcast %67 : f32 to vector<1x46xf32>
    %70 = arith.mulf %69, %68 : vector<1x46xf32>
    %71 = arith.addf %66, %70 : vector<1x46xf32>
    %c12 = arith.constant 12 : index
    %72 = memref.load %arg17[%c12] : memref<36xf32, #tpu.memory_space<smem>>
    %73 = vector.extract_strided_slice %7 {offsets = [1, 8], sizes = [1, 46], strides = [1, 1]} : vector<4x64xf32> to vector<1x46xf32>
    %74 = vector.broadcast %72 : f32 to vector<1x46xf32>
    %75 = arith.mulf %74, %73 : vector<1x46xf32>
    %76 = arith.addf %71, %75 : vector<1x46xf32>
    %c13 = arith.constant 13 : index
    %77 = memref.load %arg17[%c13] : memref<36xf32, #tpu.memory_space<smem>>
    %78 = vector.extract_strided_slice %7 {offsets = [1, 9], sizes = [1, 46], strides = [1, 1]} : vector<4x64xf32> to vector<1x46xf32>
    %79 = vector.broadcast %77 : f32 to vector<1x46xf32>
    %80 = arith.mulf %79, %78 : vector<1x46xf32>
    %81 = arith.addf %76, %80 : vector<1x46xf32>
    %c14 = arith.constant 14 : index
    %82 = memref.load %arg17[%c14] : memref<36xf32, #tpu.memory_space<smem>>
    %83 = vector.extract_strided_slice %7 {offsets = [1, 10], sizes = [1, 46], strides = [1, 1]} : vector<4x64xf32> to vector<1x46xf32>
    %84 = vector.broadcast %82 : f32 to vector<1x46xf32>
    %85 = arith.mulf %84, %83 : vector<1x46xf32>
    %86 = arith.addf %81, %85 : vector<1x46xf32>
    %c15 = arith.constant 15 : index
    %87 = memref.load %arg17[%c15] : memref<36xf32, #tpu.memory_space<smem>>
    %88 = vector.extract_strided_slice %7 {offsets = [1, 16], sizes = [1, 46], strides = [1, 1]} : vector<4x64xf32> to vector<1x46xf32>
    %89 = vector.broadcast %87 : f32 to vector<1x46xf32>
    %90 = arith.mulf %89, %88 : vector<1x46xf32>
    %91 = arith.addf %86, %90 : vector<1x46xf32>
    %c16 = arith.constant 16 : index
    %92 = memref.load %arg17[%c16] : memref<36xf32, #tpu.memory_space<smem>>
    %93 = vector.extract_strided_slice %7 {offsets = [1, 17], sizes = [1, 46], strides = [1, 1]} : vector<4x64xf32> to vector<1x46xf32>
    %94 = vector.broadcast %92 : f32 to vector<1x46xf32>
    %95 = arith.mulf %94, %93 : vector<1x46xf32>
    %96 = arith.addf %91, %95 : vector<1x46xf32>
    %c17 = arith.constant 17 : index
    %97 = memref.load %arg17[%c17] : memref<36xf32, #tpu.memory_space<smem>>
    %98 = vector.extract_strided_slice %7 {offsets = [1, 18], sizes = [1, 46], strides = [1, 1]} : vector<4x64xf32> to vector<1x46xf32>
    %99 = vector.broadcast %97 : f32 to vector<1x46xf32>
    %100 = arith.mulf %99, %98 : vector<1x46xf32>
    %101 = arith.addf %96, %100 : vector<1x46xf32>
    %c18 = arith.constant 18 : index
    %102 = memref.load %arg17[%c18] : memref<36xf32, #tpu.memory_space<smem>>
    %103 = vector.extract_strided_slice %7 {offsets = [2, 0], sizes = [1, 46], strides = [1, 1]} : vector<4x64xf32> to vector<1x46xf32>
    %104 = vector.broadcast %102 : f32 to vector<1x46xf32>
    %105 = arith.mulf %104, %103 : vector<1x46xf32>
    %106 = arith.addf %101, %105 : vector<1x46xf32>
    %c19 = arith.constant 19 : index
    %107 = memref.load %arg17[%c19] : memref<36xf32, #tpu.memory_space<smem>>
    %108 = vector.extract_strided_slice %7 {offsets = [2, 1], sizes = [1, 46], strides = [1, 1]} : vector<4x64xf32> to vector<1x46xf32>
    %109 = vector.broadcast %107 : f32 to vector<1x46xf32>
    %110 = arith.mulf %109, %108 : vector<1x46xf32>
    %111 = arith.addf %106, %110 : vector<1x46xf32>
    %c20 = arith.constant 20 : index
    %112 = memref.load %arg17[%c20] : memref<36xf32, #tpu.memory_space<smem>>
    %113 = vector.extract_strided_slice %7 {offsets = [2, 2], sizes = [1, 46], strides = [1, 1]} : vector<4x64xf32> to vector<1x46xf32>
    %114 = vector.broadcast %112 : f32 to vector<1x46xf32>
    %115 = arith.mulf %114, %113 : vector<1x46xf32>
    %116 = arith.addf %111, %115 : vector<1x46xf32>
    %c21 = arith.constant 21 : index
    %117 = memref.load %arg17[%c21] : memref<36xf32, #tpu.memory_space<smem>>
    %118 = vector.extract_strided_slice %7 {offsets = [2, 8], sizes = [1, 46], strides = [1, 1]} : vector<4x64xf32> to vector<1x46xf32>
    %119 = vector.broadcast %117 : f32 to vector<1x46xf32>
    %120 = arith.mulf %119, %118 : vector<1x46xf32>
    %121 = arith.addf %116, %120 : vector<1x46xf32>
    %c22 = arith.constant 22 : index
    %122 = memref.load %arg17[%c22] : memref<36xf32, #tpu.memory_space<smem>>
    %123 = vector.extract_strided_slice %7 {offsets = [2, 9], sizes = [1, 46], strides = [1, 1]} : vector<4x64xf32> to vector<1x46xf32>
    %124 = vector.broadcast %122 : f32 to vector<1x46xf32>
    %125 = arith.mulf %124, %123 : vector<1x46xf32>
    %126 = arith.addf %121, %125 : vector<1x46xf32>
    %c23 = arith.constant 23 : index
    %127 = memref.load %arg17[%c23] : memref<36xf32, #tpu.memory_space<smem>>
    %128 = vector.extract_strided_slice %7 {offsets = [2, 10], sizes = [1, 46], strides = [1, 1]} : vector<4x64xf32> to vector<1x46xf32>
    %129 = vector.broadcast %127 : f32 to vector<1x46xf32>
    %130 = arith.mulf %129, %128 : vector<1x46xf32>
    %131 = arith.addf %126, %130 : vector<1x46xf32>
    %c24 = arith.constant 24 : index
    %132 = memref.load %arg17[%c24] : memref<36xf32, #tpu.memory_space<smem>>
    %133 = vector.extract_strided_slice %7 {offsets = [2, 16], sizes = [1, 46], strides = [1, 1]} : vector<4x64xf32> to vector<1x46xf32>
    %134 = vector.broadcast %132 : f32 to vector<1x46xf32>
    %135 = arith.mulf %134, %133 : vector<1x46xf32>
    %136 = arith.addf %131, %135 : vector<1x46xf32>
    %c25 = arith.constant 25 : index
    %137 = memref.load %arg17[%c25] : memref<36xf32, #tpu.memory_space<smem>>
    %138 = vector.extract_strided_slice %7 {offsets = [2, 17], sizes = [1, 46], strides = [1, 1]} : vector<4x64xf32> to vector<1x46xf32>
    %139 = vector.broadcast %137 : f32 to vector<1x46xf32>
    %140 = arith.mulf %139, %138 : vector<1x46xf32>
    %141 = arith.addf %136, %140 : vector<1x46xf32>
    %c26 = arith.constant 26 : index
    %142 = memref.load %arg17[%c26] : memref<36xf32, #tpu.memory_space<smem>>
    %143 = vector.extract_strided_slice %7 {offsets = [2, 18], sizes = [1, 46], strides = [1, 1]} : vector<4x64xf32> to vector<1x46xf32>
    %144 = vector.broadcast %142 : f32 to vector<1x46xf32>
    %145 = arith.mulf %144, %143 : vector<1x46xf32>
    %146 = arith.addf %141, %145 : vector<1x46xf32>
    %c27 = arith.constant 27 : index
    %147 = memref.load %arg17[%c27] : memref<36xf32, #tpu.memory_space<smem>>
    %148 = vector.extract_strided_slice %7 {offsets = [3, 0], sizes = [1, 46], strides = [1, 1]} : vector<4x64xf32> to vector<1x46xf32>
    %149 = vector.broadcast %147 : f32 to vector<1x46xf32>
    %150 = arith.mulf %149, %148 : vector<1x46xf32>
    %151 = arith.addf %146, %150 : vector<1x46xf32>
    %c28 = arith.constant 28 : index
    %152 = memref.load %arg17[%c28] : memref<36xf32, #tpu.memory_space<smem>>
    %153 = vector.extract_strided_slice %7 {offsets = [3, 1], sizes = [1, 46], strides = [1, 1]} : vector<4x64xf32> to vector<1x46xf32>
    %154 = vector.broadcast %152 : f32 to vector<1x46xf32>
    %155 = arith.mulf %154, %153 : vector<1x46xf32>
    %156 = arith.addf %151, %155 : vector<1x46xf32>
    %c29 = arith.constant 29 : index
    %157 = memref.load %arg17[%c29] : memref<36xf32, #tpu.memory_space<smem>>
    %158 = vector.extract_strided_slice %7 {offsets = [3, 2], sizes = [1, 46], strides = [1, 1]} : vector<4x64xf32> to vector<1x46xf32>
    %159 = vector.broadcast %157 : f32 to vector<1x46xf32>
    %160 = arith.mulf %159, %158 : vector<1x46xf32>
    %161 = arith.addf %156, %160 : vector<1x46xf32>
    %c30 = arith.constant 30 : index
    %162 = memref.load %arg17[%c30] : memref<36xf32, #tpu.memory_space<smem>>
    %163 = vector.extract_strided_slice %7 {offsets = [3, 8], sizes = [1, 46], strides = [1, 1]} : vector<4x64xf32> to vector<1x46xf32>
    %164 = vector.broadcast %162 : f32 to vector<1x46xf32>
    %165 = arith.mulf %164, %163 : vector<1x46xf32>
    %166 = arith.addf %161, %165 : vector<1x46xf32>
    %c31 = arith.constant 31 : index
    %167 = memref.load %arg17[%c31] : memref<36xf32, #tpu.memory_space<smem>>
    %168 = vector.extract_strided_slice %7 {offsets = [3, 9], sizes = [1, 46], strides = [1, 1]} : vector<4x64xf32> to vector<1x46xf32>
    %169 = vector.broadcast %167 : f32 to vector<1x46xf32>
    %170 = arith.mulf %169, %168 : vector<1x46xf32>
    %171 = arith.addf %166, %170 : vector<1x46xf32>
    %c32 = arith.constant 32 : index
    %172 = memref.load %arg17[%c32] : memref<36xf32, #tpu.memory_space<smem>>
    %173 = vector.extract_strided_slice %7 {offsets = [3, 10], sizes = [1, 46], strides = [1, 1]} : vector<4x64xf32> to vector<1x46xf32>
    %174 = vector.broadcast %172 : f32 to vector<1x46xf32>
    %175 = arith.mulf %174, %173 : vector<1x46xf32>
    %176 = arith.addf %171, %175 : vector<1x46xf32>
    %c33 = arith.constant 33 : index
    %177 = memref.load %arg17[%c33] : memref<36xf32, #tpu.memory_space<smem>>
    %178 = vector.extract_strided_slice %7 {offsets = [3, 16], sizes = [1, 46], strides = [1, 1]} : vector<4x64xf32> to vector<1x46xf32>
    %179 = vector.broadcast %177 : f32 to vector<1x46xf32>
    %180 = arith.mulf %179, %178 : vector<1x46xf32>
    %181 = arith.addf %176, %180 : vector<1x46xf32>
    %c34 = arith.constant 34 : index
    %182 = memref.load %arg17[%c34] : memref<36xf32, #tpu.memory_space<smem>>
    %183 = vector.extract_strided_slice %7 {offsets = [3, 17], sizes = [1, 46], strides = [1, 1]} : vector<4x64xf32> to vector<1x46xf32>
    %184 = vector.broadcast %182 : f32 to vector<1x46xf32>
    %185 = arith.mulf %184, %183 : vector<1x46xf32>
    %186 = arith.addf %181, %185 : vector<1x46xf32>
    %c35 = arith.constant 35 : index
    %187 = memref.load %arg17[%c35] : memref<36xf32, #tpu.memory_space<smem>>
    %188 = vector.extract_strided_slice %7 {offsets = [3, 18], sizes = [1, 46], strides = [1, 1]} : vector<4x64xf32> to vector<1x46xf32>
    %189 = vector.broadcast %187 : f32 to vector<1x46xf32>
    %190 = arith.mulf %189, %188 : vector<1x46xf32>
    %191 = arith.addf %186, %190 : vector<1x46xf32>
    %192 = arith.negf %191 : vector<1x46xf32>
    %193 = math.exp %192 : vector<1x46xf32>
    %cst_9 = arith.constant 1.000000e+00 : f32
    %194 = vector.broadcast %cst_9 : f32 to vector<1x46xf32>
    %195 = arith.addf %194, %193 : vector<1x46xf32>
    %196 = arith.divf %194, %195 : vector<1x46xf32>
    %197 = vector.extract_strided_slice %196 {offsets = [0, 0], sizes = [1, 37], strides = [1, 1]} : vector<1x46xf32> to vector<1x37xf32>
    %198 = vector.extract_strided_slice %196 {offsets = [0, 1], sizes = [1, 37], strides = [1, 1]} : vector<1x46xf32> to vector<1x37xf32>
    %199 = arith.maximumf %197, %198 : vector<1x37xf32>
    %200 = vector.extract_strided_slice %196 {offsets = [0, 8], sizes = [1, 37], strides = [1, 1]} : vector<1x46xf32> to vector<1x37xf32>
    %201 = vector.extract_strided_slice %196 {offsets = [0, 9], sizes = [1, 37], strides = [1, 1]} : vector<1x46xf32> to vector<1x37xf32>
    %202 = arith.maximumf %200, %201 : vector<1x37xf32>
    %203 = arith.maximumf %199, %202 : vector<1x37xf32>
    %c0_10 = arith.constant 0 : index
    %204 = memref.load %arg19[%c0_10] : memref<4xf32, #tpu.memory_space<smem>>
    %c1_11 = arith.constant 1 : index
    %205 = memref.load %arg19[%c1_11] : memref<4xf32, #tpu.memory_space<smem>>
    %c2_12 = arith.constant 2 : index
    %206 = memref.load %arg19[%c2_12] : memref<4xf32, #tpu.memory_space<smem>>
    %c3_13 = arith.constant 3 : index
    %207 = memref.load %arg19[%c3_13] : memref<4xf32, #tpu.memory_space<smem>>
    %c0_14 = arith.constant 0 : index
    %c0_15 = arith.constant 0 : index
    %208 = vector.load %arg3[%c0_14, %c0_15] : memref<1x5xf32, #tpu.memory_space<vmem>>, vector<1x5xf32>
    %c0_16 = arith.constant 0 : index
    %c0_17 = arith.constant 0 : index
    %209 = vector.load %arg4[%c0_16, %c0_17] : memref<5x10xf32, #tpu.memory_space<vmem>>, vector<5x10xf32>
    %cst_18 = arith.constant dense<0.000000e+00> : vector<1x10xf32>
    %210 = tpu.matmul %208, %209, %cst_18 {dimension_numbers = #tpu.dot_dimension_numbers<[1], [0], [0], [1], [0, 0, 1, 1], [], []>} : vector<1x5xf32>, vector<5x10xf32>, vector<1x10xf32> -> vector<1x10xf32>
    %c0_19 = arith.constant 0 : index
    %c0_20 = arith.constant 0 : index
    %211 = vector.load %arg5[%c0_19, %c0_20] : memref<1x10xf32, #tpu.memory_space<vmem>>, vector<1x10xf32>
    %212 = arith.addf %210, %211 : vector<1x10xf32>
    %cst_21 = arith.constant 0.000000e+00 : f32
    %213 = vector.broadcast %cst_21 : f32 to vector<1x10xf32>
    %214 = arith.cmpf ogt, %212, %213 : vector<1x10xf32>
    %215 = vector.broadcast %204 : f32 to vector<1x10xf32>
    %216 = arith.mulf %215, %212 : vector<1x10xf32>
    %217 = arith.select %214, %212, %216 : vector<1x10xi1>, vector<1x10xf32>
    %c0_22 = arith.constant 0 : index
    %c0_23 = arith.constant 0 : index
    %218 = vector.load %arg6[%c0_22, %c0_23] : memref<10x10xf32, #tpu.memory_space<vmem>>, vector<10x10xf32>
    %cst_24 = arith.constant dense<0.000000e+00> : vector<1x10xf32>
    %219 = tpu.matmul %217, %218, %cst_24 {dimension_numbers = #tpu.dot_dimension_numbers<[1], [0], [0], [1], [0, 0, 1, 1], [], []>} : vector<1x10xf32>, vector<10x10xf32>, vector<1x10xf32> -> vector<1x10xf32>
    %c0_25 = arith.constant 0 : index
    %c0_26 = arith.constant 0 : index
    %220 = vector.load %arg7[%c0_25, %c0_26] : memref<1x10xf32, #tpu.memory_space<vmem>>, vector<1x10xf32>
    %221 = arith.addf %219, %220 : vector<1x10xf32>
    %cst_27 = arith.constant 0.000000e+00 : f32
    %222 = vector.broadcast %cst_27 : f32 to vector<1x10xf32>
    %223 = arith.cmpf ogt, %221, %222 : vector<1x10xf32>
    %224 = vector.broadcast %205 : f32 to vector<1x10xf32>
    %225 = arith.mulf %224, %221 : vector<1x10xf32>
    %226 = arith.select %223, %221, %225 : vector<1x10xi1>, vector<1x10xf32>
    %c0_28 = arith.constant 0 : index
    %c0_29 = arith.constant 0 : index
    %227 = vector.load %arg8[%c0_28, %c0_29] : memref<10x9xf32, #tpu.memory_space<vmem>>, vector<10x9xf32>
    %cst_30 = arith.constant dense<0.000000e+00> : vector<1x9xf32>
    %228 = tpu.matmul %226, %227, %cst_30 {dimension_numbers = #tpu.dot_dimension_numbers<[1], [0], [0], [1], [0, 0, 1, 1], [], []>} : vector<1x10xf32>, vector<10x9xf32>, vector<1x9xf32> -> vector<1x9xf32>
    %c0_31 = arith.constant 0 : index
    %c0_32 = arith.constant 0 : index
    %229 = vector.load %arg9[%c0_31, %c0_32] : memref<1x9xf32, #tpu.memory_space<vmem>>, vector<1x9xf32>
    %230 = arith.addf %228, %229 : vector<1x9xf32>
    %231 = arith.negf %230 : vector<1x9xf32>
    %232 = math.exp %231 : vector<1x9xf32>
    %cst_33 = arith.constant 1.000000e+00 : f32
    %233 = vector.broadcast %cst_33 : f32 to vector<1x9xf32>
    %234 = arith.addf %233, %232 : vector<1x9xf32>
    %235 = arith.divf %233, %234 : vector<1x9xf32>
    %c0_34 = arith.constant 0 : index
    %c0_35 = arith.constant 0 : index
    %236 = vector.load %arg10[%c0_34, %c0_35] : memref<37x18xf32, #tpu.memory_space<vmem>>, vector<37x18xf32>
    %cst_36 = arith.constant dense<0.000000e+00> : vector<1x18xf32>
    %237 = tpu.matmul %203, %236, %cst_36 {dimension_numbers = #tpu.dot_dimension_numbers<[1], [0], [0], [1], [0, 0, 1, 1], [], []>} : vector<1x37xf32>, vector<37x18xf32>, vector<1x18xf32> -> vector<1x18xf32>
    %c0_37 = arith.constant 0 : index
    %c0_38 = arith.constant 0 : index
    %238 = vector.load %arg11[%c0_37, %c0_38] : memref<9x18xf32, #tpu.memory_space<vmem>>, vector<9x18xf32>
    %cst_39 = arith.constant dense<0.000000e+00> : vector<1x18xf32>
    %239 = tpu.matmul %235, %238, %cst_39 {dimension_numbers = #tpu.dot_dimension_numbers<[1], [0], [0], [1], [0, 0, 1, 1], [], []>} : vector<1x9xf32>, vector<9x18xf32>, vector<1x18xf32> -> vector<1x18xf32>
    %240 = arith.addf %237, %239 : vector<1x18xf32>
    %c0_40 = arith.constant 0 : index
    %c0_41 = arith.constant 0 : index
    %241 = vector.load %arg12[%c0_40, %c0_41] : memref<1x18xf32, #tpu.memory_space<vmem>>, vector<1x18xf32>
    %242 = arith.addf %240, %241 : vector<1x18xf32>
    %cst_42 = arith.constant 0.000000e+00 : f32
    %243 = vector.broadcast %cst_42 : f32 to vector<1x18xf32>
    %244 = arith.cmpf ogt, %242, %243 : vector<1x18xf32>
    %245 = vector.broadcast %206 : f32 to vector<1x18xf32>
    %246 = arith.mulf %245, %242 : vector<1x18xf32>
    %247 = arith.select %244, %242, %246 : vector<1x18xi1>, vector<1x18xf32>
    %c0_43 = arith.constant 0 : index
    %c0_44 = arith.constant 0 : index
    %248 = vector.load %arg13[%c0_43, %c0_44] : memref<18x18xf32, #tpu.memory_space<vmem>>, vector<18x18xf32>
    %cst_45 = arith.constant dense<0.000000e+00> : vector<1x18xf32>
    %249 = tpu.matmul %247, %248, %cst_45 {dimension_numbers = #tpu.dot_dimension_numbers<[1], [0], [0], [1], [0, 0, 1, 1], [], []>} : vector<1x18xf32>, vector<18x18xf32>, vector<1x18xf32> -> vector<1x18xf32>
    %c0_46 = arith.constant 0 : index
    %c0_47 = arith.constant 0 : index
    %250 = vector.load %arg14[%c0_46, %c0_47] : memref<1x18xf32, #tpu.memory_space<vmem>>, vector<1x18xf32>
    %251 = arith.addf %249, %250 : vector<1x18xf32>
    %cst_48 = arith.constant 0.000000e+00 : f32
    %252 = vector.broadcast %cst_48 : f32 to vector<1x18xf32>
    %253 = arith.cmpf ogt, %251, %252 : vector<1x18xf32>
    %254 = vector.broadcast %207 : f32 to vector<1x18xf32>
    %255 = arith.mulf %254, %251 : vector<1x18xf32>
    %256 = arith.select %253, %251, %255 : vector<1x18xi1>, vector<1x18xf32>
    %c0_49 = arith.constant 0 : index
    %c0_50 = arith.constant 0 : index
    %257 = vector.load %arg15[%c0_49, %c0_50] : memref<18x4xf32, #tpu.memory_space<vmem>>, vector<18x4xf32>
    %cst_51 = arith.constant dense<0.000000e+00> : vector<1x4xf32>
    %258 = tpu.matmul %256, %257, %cst_51 {dimension_numbers = #tpu.dot_dimension_numbers<[1], [0], [0], [1], [0, 0, 1, 1], [], []>} : vector<1x18xf32>, vector<18x4xf32>, vector<1x4xf32> -> vector<1x4xf32>
    %c0_52 = arith.constant 0 : index
    %c0_53 = arith.constant 0 : index
    %259 = vector.load %arg16[%c0_52, %c0_53] : memref<1x4xf32, #tpu.memory_space<vmem>>, vector<1x4xf32>
    %260 = arith.addf %258, %259 : vector<1x4xf32>
    %261 = arith.negf %260 : vector<1x4xf32>
    %262 = math.exp %261 : vector<1x4xf32>
    %cst_54 = arith.constant 1.000000e+00 : f32
    %263 = vector.broadcast %cst_54 : f32 to vector<1x4xf32>
    %264 = arith.addf %263, %262 : vector<1x4xf32>
    %265 = arith.divf %263, %264 : vector<1x4xf32>
    %c0_55 = arith.constant 0 : index
    %c0_56 = arith.constant 0 : index
    %266 = vector.load %arg20[%c0_55, %c0_56] : memref<1x4xf32, #tpu.memory_space<vmem>>, vector<1x4xf32>
    tpu.vector_store %arg20[%c0_55, %c0_56], %265 {strides = array<i32>} : memref<1x4xf32, #tpu.memory_space<vmem>>, vector<1x4xf32>,
    return
  }
}

</mosaic_0001>

<bundles_post_ra>
// kernel: comn_01_forward.3
= control target key start
LH: loop header
LB: loop body
LE: loop exit
PB: predicated region body
PF: predicated region fallthrough
CT: control target
= control target key end

     0   :  { %vm173_vm0 = vcmask 1042432   ;;  %v1180_v3 = vmov 0   ;;  %vm169_vm1 = vcmask 220160   ;;  %vm1098_vm2 = vcmask 128000   ;;  %s1914_s1 = inlined_call_operand.vmem [shape: f32[27,4624], index: 1, kind: input, shape index: {}]   ;;  %s1915_s0 = inlined_call_operand.vmem [shape: f32[6,27], index: 0, kind: input, shape index: {}]   ;;  %s1916_s2 = inlined_call_operand.vmem [shape: f32[6,1], index: 2, kind: input, shape index: {}]   ;;  %s1917_s3 = inlined_call_operand.vmem [shape: f32[6,4624], index: 3, kind: output, shape index: {}]  }
   0x1   :  { %v126_v0 = vld [vmem:[%s1914_s1 + $0x378] sm:$0x7]  ;;  %v89_v1 = vld [vmem:[%s1914_s1 + $0x250] sm:$0xff]  ;;  %v128_v2 = vld [vmem:[%s1914_s1 + $0x388] sm:$0x7]  ;;  %1179 = vset.pattern.permute.xlu0 %v1180_v3 }
   0x2   :  { %1104 = vmatpush.msk.msra.mxu0 %vm173_vm0, %v126_v0  ;;  %1108 = vmatpush.msk.msra.mxu2 %vm173_vm0, %v128_v2  ;;  %v129_v4 = vld [vmem:[%s1914_s1 + $0x390] sm:$0x7]  ;;  %v91_v5 = vld [vmem:[%s1914_s1 + $0x260] sm:$0xff]  ;;  %v52_v6 = vld [vmem:[%s1914_s1 + $0x128] sm:$0xff] }
   0x3   :  { %1110 = vmatpush.msk.msra.mxu3 %vm173_vm0, %v129_v4  ;;  %v92_v7 = vld [vmem:[%s1914_s1 + $0x268] sm:$0xff]  ;;  %v54_v8 = vld [vmem:[%s1914_s1 + $0x138] sm:$0xff]  ;;  %v55_v9 = vld [vmem:[%s1914_s1 + $0x140] sm:$0xff] }
   0x4   :  { %298 = vmatpush.msra.mxu0 %v89_v1  ;;  %338 = vmatpush.msra.mxu2 %v91_v5  ;;  %v15_v10 = vld [vmem:[%s1914_s1] sm:$0xff]  ;;  %v17_v12 = vld [vmem:[%s1914_s1 + $0x10] sm:$0xff]  ;;  %v18_v14 = vld [vmem:[%s1914_s1 + $0x18] sm:$0xff] }
   0x5   :  { %358 = vmatpush.msra.mxu3 %v92_v7  ;;  %v127_v11 = vld [vmem:[%s1914_s1 + $0x380] sm:$0x7]  ;;  %v130_v15 = vld [vmem:[%s1914_s1 + $0x398] sm:$0x7]  ;;  %v132_v16 = vld [vmem:[%s1914_s1 + $0x3a8] sm:$0x7] }
   0x6   :  { %299 = vmatpush.msra.mxu0 %v52_v6  ;;  %339 = vmatpush.msra.mxu2 %v54_v8  ;;  %v1243_v13 = vld [vmem:[%s1915_s0] sm:$0x3f]  ;;  %v93_v17 = vld [vmem:[%s1914_s1 + $0x270] sm:$0xff]  ;;  %v90_v19 = vld [vmem:[%s1914_s1 + $0x258] sm:$0xff] }
   0x7   :  { %359 = vmatpush.msra.mxu3 %v55_v9  ;;  %1106 = vmatpush.msk.msra.mxu1 %vm173_vm0, %v127_v11  ;;  %v133_v18 = vld [vmem:[%s1914_s1 + $0x3b0] sm:$0x7]  ;;  %v95_v20 = vld [vmem:[%s1914_s1 + $0x280] sm:$0xff]  ;;  %v56_v21 = vld [vmem:[%s1914_s1 + $0x148] sm:$0xff] }
   0x8   :  { %300 = vmatpush.msra.mxu0 %v15_v10  ;;  %340 = vmatpush.msra.mxu2 %v17_v12  ;;  %v96_v22 = vld [vmem:[%s1914_s1 + $0x288] sm:$0xff]  ;;  %v53_v23 = vld [vmem:[%s1914_s1 + $0x130] sm:$0xff]  ;;  %v58_v24 = vld [vmem:[%s1914_s1 + $0x158] sm:$0xff] }
   0x9   :  { %1105 = vmatmul.msk.f32.vlgmr.msra.gmra.mxu0 %vm169_vm1, %v1243_v13  ;;  %360 = vmatpush.msra.mxu3 %v18_v14  ;;  %v19_v25 = vld [vmem:[%s1914_s1 + $0x20] sm:$0xff]  ;;  %v16_v27 = vld [vmem:[%s1914_s1 + $0x8] sm:$0xff]  ;;  %v21_v28 = vld [vmem:[%s1914_s1 + $0x30] sm:$0xff] }
   0xa   :  { %1112 = vmatpush.msk.msrb.mxu0 %vm173_vm0, %v130_v15  ;;  %1109 = vmatmul.msk.f32.vlgmr.msra.gmra.mxu2 %vm169_vm1, %v1243_v13  ;;  %v59_v26 = vld [vmem:[%s1914_s1 + $0x160] sm:$0xff]  ;;  %v22_v30 = vld [vmem:[%s1914_s1 + $0x38] sm:$0xff]  ;;  %v97_v33 = vld [vmem:[%s1914_s1 + $0x290] sm:$0xff] }
   0xb   :  { %1111 = vmatmul.msk.f32.vlgmr.msra.gmra.mxu3 %vm169_vm1, %v1243_v13  ;;  %1116 = vmatpush.msk.msrb.mxu2 %vm173_vm0, %v132_v16  ;;  %v131_v29 = vld [vmem:[%s1914_s1 + $0x3a0] sm:$0x7]  ;;  %v134_v31 = vld [vmem:[%s1914_s1 + $0x3b8] sm:$0x7]  ;;  %v136_v34 = vld [vmem:[%s1914_s1 + $0x3c8] sm:$0x7] }
   0xc   :  { %378 = vmatpush.msrb.mxu0 %v93_v17  ;;  %1118 = vmatpush.msk.msrb.mxu3 %vm173_vm0, %v133_v18  ;;  %v94_v32 = vld [vmem:[%s1914_s1 + $0x278] sm:$0xff]  ;;  %v137_v35 = vld [vmem:[%s1914_s1 + $0x3d0] sm:$0x7]  ;;  %v163_v36 = vld [vmem:[%s1916_s2] sm:$0x3f] }
   0xd   :  { %318 = vmatpush.msra.mxu1 %v90_v19  ;;  %418 = vmatpush.msrb.mxu2 %v95_v20  ;;  %v57_v37 = vld [vmem:[%s1914_s1 + $0x150] sm:$0xff]  ;;  %v60_v38 = vld [vmem:[%s1914_s1 + $0x168] sm:$0xff]  ;;  %v99_v39 = vld [vmem:[%s1914_s1 + $0x2a0] sm:$0xff] }
   0xe   :  { %379 = vmatpush.msrb.mxu0 %v56_v21  ;;  %438 = vmatpush.msrb.mxu3 %v96_v22  ;;  %v100_v40 = vld [vmem:[%s1914_s1 + $0x2a8] sm:$0xff]  ;;  %v23_v42 = vld [vmem:[%s1914_s1 + $0x40] sm:$0xff]  ;;  %v62_v43 = vld [vmem:[%s1914_s1 + $0x178] sm:$0xff] }
   0xf   :  { %319 = vmatpush.msra.mxu1 %v53_v23  ;;  %419 = vmatpush.msrb.mxu2 %v58_v24  ;;  %v20_v41 = vld [vmem:[%s1914_s1 + $0x28] sm:$0xff]  ;;  %v63_v44 = vld [vmem:[%s1914_s1 + $0x180] sm:$0xff]  ;;  %v25_v46 = vld [vmem:[%s1914_s1 + $0x50] sm:$0xff] }
  0x10   :  { %380 = vmatpush.msrb.mxu0 %v19_v25  ;;  %439 = vmatpush.msrb.mxu3 %v59_v26  ;;  %v135_v45 = vld [vmem:[%s1914_s1 + $0x3c0] sm:$0x7]  ;;  %v26_v47 = vld [vmem:[%s1914_s1 + $0x58] sm:$0xff]  ;;  %v101_v50 = vld [vmem:[%s1914_s1 + $0x2b0] sm:$0xff] }
  0x11   :  { %320 = vmatpush.msra.mxu1 %v16_v27  ;;  %1113 = vmatmul.msk.f32.vlgmr.msrb.gmra.mxu0 %vm169_vm1, %v1243_v13  ;;  %v138_v48 = vld [vmem:[%s1914_s1 + $0x3d8] sm:$0x7]  ;;  %v140_v51 = vld [vmem:[%s1914_s1 + $0x3e8] sm:$0x7]  ;;  %v141_v52 = vld [vmem:[%s1914_s1 + $0x3f0] sm:$0x7] }
  0x12   :  { %1107 = vmatmul.msk.f32.vlgmr.msra.gmra.mxu1 %vm169_vm1, %v1243_v13  ;;  %420 = vmatpush.msrb.mxu2 %v21_v28  ;;  %v98_v49 = vld [vmem:[%s1914_s1 + $0x298] sm:$0xff]  ;;  %v61_v53 = vld [vmem:[%s1914_s1 + $0x170] sm:$0xff]  ;;  %v64_v54 = vld [vmem:[%s1914_s1 + $0x188] sm:$0xff] }
  0x13   :  { %1114 = vmatpush.msk.msrb.mxu1 %vm173_vm0, %v131_v29  ;;  %440 = vmatpush.msrb.mxu3 %v22_v30  ;;  %v103_v55 = vld [vmem:[%s1914_s1 + $0x2c0] sm:$0xff]  ;;  %v104_v56 = vld [vmem:[%s1914_s1 + $0x2c8] sm:$0xff]  ;;  %v66_v59 = vld [vmem:[%s1914_s1 + $0x198] sm:$0xff] }
  0x14   :  { %1120 = vmatpush.msk.msra.mxu0 %vm173_vm0, %v134_v31  ;;  %1117 = vmatmul.msk.f32.vlgmr.msrb.gmra.mxu2 %vm169_vm1, %v1243_v13  ;;  %v24_v57 = vld [vmem:[%s1914_s1 + $0x48] sm:$0xff]  ;;  %v27_v58 = vld [vmem:[%s1914_s1 + $0x60] sm:$0xff]  ;;  %v29_v62 = vld [vmem:[%s1914_s1 + $0x70] sm:$0xff] }
  0x15   :  { %398 = vmatpush.msrb.mxu1 %v94_v32  ;;  %1119 = vmatmul.msk.f32.vlgmr.msrb.gmra.mxu3 %vm169_vm1, %v1243_v13  ;;  %v67_v60 = vld [vmem:[%s1914_s1 + $0x1a0] sm:$0xff]  ;;  %v30_v63 = vld [vmem:[%s1914_s1 + $0x78] sm:$0xff]  ;;  %v105_v2 = vld [vmem:[%s1914_s1 + $0x2d0] sm:$0xff] }
  0x16   :  { %458 = vmatpush.msra.mxu0 %v97_v33  ;;  %1124 = vmatpush.msk.msra.mxu2 %vm173_vm0, %v136_v34  ;;  %v139_v61 = vld [vmem:[%s1914_s1 + $0x3e0] sm:$0x7]  ;;  %v142_v0 = vld [vmem:[%s1914_s1 + $0x3f8] sm:$0x7]  ;;  %v144_v3 = vld [vmem:[%s1914_s1 + $0x408] sm:$0x7] }
  0x17   :  { %1126 = vmatpush.msk.msra.mxu3 %vm173_vm0, %v137_v35  ;;  %166 = vperm.xlu0 %1179, %v163_v36   ;;  %v102_v1 = vld [vmem:[%s1914_s1 + $0x2b8] sm:$0xff]  ;;  %v145_v4 = vld [vmem:[%s1914_s1 + $0x410] sm:$0x7]  ;;  %v68_v6 = vld [vmem:[%s1914_s1 + $0x1a8] sm:$0xff] }
  0x18   :  { %399 = vmatpush.msrb.mxu1 %v57_v37  ;;  %459 = vmatpush.msra.mxu0 %v60_v38  ;;  %v65_v5 = vld [vmem:[%s1914_s1 + $0x190] sm:$0xff]  ;;  %v107_v7 = vld [vmem:[%s1914_s1 + $0x2e0] sm:$0xff]  ;;  %v108_v8 = vld [vmem:[%s1914_s1 + $0x2e8] sm:$0xff] }
  0x19   :  { %498 = vmatpush.msra.mxu2 %v99_v39  ;;  %518 = vmatpush.msra.mxu3 %v100_v40  ;;  %v28_v9 = vld [vmem:[%s1914_s1 + $0x68] sm:$0xff]  ;;  %v31_v10 = vld [vmem:[%s1914_s1 + $0x80] sm:$0xff]  ;;  %v70_v11 = vld [vmem:[%s1914_s1 + $0x1b8] sm:$0xff] }
  0x1a   :  { %400 = vmatpush.msrb.mxu1 %v20_v41  ;;  %460 = vmatpush.msra.mxu0 %v23_v42  ;;  %v71_v12 = vld [vmem:[%s1914_s1 + $0x1c0] sm:$0xff]  ;;  %v33_v15 = vld [vmem:[%s1914_s1 + $0x90] sm:$0xff]  ;;  %v34_v16 = vld [vmem:[%s1914_s1 + $0x98] sm:$0xff] }
  0x1b   :  { %499 = vmatpush.msra.mxu2 %v62_v43  ;;  %519 = vmatpush.msra.mxu3 %v63_v44  ;;  %v143_v14 = vld [vmem:[%s1914_s1 + $0x400] sm:$0x7]  ;;  %v146_v17 = vld [vmem:[%s1914_s1 + $0x418] sm:$0x7]  ;;  %v109_v19 = vld [vmem:[%s1914_s1 + $0x2f0] sm:$0xff] }
  0x1c   :  { %1115 = vmatmul.msk.f32.vlgmr.msrb.gmra.mxu1 %vm169_vm1, %v1243_v13  ;;  %1121 = vmatmul.msk.f32.vlgmr.msra.gmra.mxu0 %vm169_vm1, %v1243_v13  ;;  %v106_v18 = vld [vmem:[%s1914_s1 + $0x2d8] sm:$0xff]  ;;  %v148_v20 = vld [vmem:[%s1914_s1 + $0x428] sm:$0x7]  ;;  %v149_v21 = vld [vmem:[%s1914_s1 + $0x430] sm:$0x7] }
  0x1d   :  { %1122 = vmatpush.msk.msra.mxu1 %vm173_vm0, %v135_v45  ;;  %500 = vmatpush.msra.mxu2 %v25_v46  ;;  %v69_v22 = vld [vmem:[%s1914_s1 + $0x1b0] sm:$0xff]  ;;  %v72_v23 = vld [vmem:[%s1914_s1 + $0x1c8] sm:$0xff]  ;;  %v111_v24 = vld [vmem:[%s1914_s1 + $0x300] sm:$0xff] }
  0x1e   :  { %520 = vmatpush.msra.mxu3 %v26_v47  ;;  %1128 = vmatpush.msk.msrb.mxu0 %vm173_vm0, %v138_v48  ;;  %v112_v25 = vld [vmem:[%s1914_s1 + $0x308] sm:$0xff]  ;;  %v35_v27 = vld [vmem:[%s1914_s1 + $0xa0] sm:$0xff]  ;;  %v74_v28 = vld [vmem:[%s1914_s1 + $0x1d8] sm:$0xff] }
  0x1f   :  { %478 = vmatpush.msra.mxu1 %v98_v49  ;;  %1125 = vmatmul.msk.f32.vlgmr.msra.gmra.mxu2 %vm169_vm1, %v1243_v13  ;;  %v32_v26 = vld [vmem:[%s1914_s1 + $0x88] sm:$0xff]  ;;  %v75_v29 = vld [vmem:[%s1914_s1 + $0x1e0] sm:$0xff]  ;;  %v37_v31 = vld [vmem:[%s1914_s1 + $0xb0] sm:$0xff] }
  0x20   :  { %1127 = vmatmul.msk.f32.vlgmr.msra.gmra.mxu3 %vm169_vm1, %v1243_v13  ;;  %538 = vmatpush.msrb.mxu0 %v101_v50  ;;  %v147_v30 = vld [vmem:[%s1914_s1 + $0x420] sm:$0x7]  ;;  %v38_v32 = vld [vmem:[%s1914_s1 + $0xb8] sm:$0xff]  ;;  %v113_v35 = vld [vmem:[%s1914_s1 + $0x310] sm:$0xff] }
  0x21   :  { %1132 = vmatpush.msk.msrb.mxu2 %vm173_vm0, %v140_v51  ;;  %1134 = vmatpush.msk.msrb.mxu3 %vm173_vm0, %v141_v52  ;;  %v150_v33 = vld [vmem:[%s1914_s1 + $0x438] sm:$0x7]  ;;  %v152_v36 = vld [vmem:[%s1914_s1 + $0x448] sm:$0x7]  ;;  %v153_v37 = vld [vmem:[%s1914_s1 + $0x450] sm:$0x7] }
  0x22   :  { %479 = vmatpush.msra.mxu1 %v61_v53  ;;  %539 = vmatpush.msrb.mxu0 %v64_v54  ;;  %v110_v34 = vld [vmem:[%s1914_s1 + $0x2f8] sm:$0xff]  ;;  %v73_v38 = vld [vmem:[%s1914_s1 + $0x1d0] sm:$0xff]  ;;  %v76_v39 = vld [vmem:[%s1914_s1 + $0x1e8] sm:$0xff] }
  0x23   :  { %578 = vmatpush.msrb.mxu2 %v103_v55  ;;  %598 = vmatpush.msrb.mxu3 %v104_v56  ;;  %v115_v40 = vld [vmem:[%s1914_s1 + $0x320] sm:$0xff]  ;;  %v116_v41 = vld [vmem:[%s1914_s1 + $0x328] sm:$0xff]  ;;  %v78_v44 = vld [vmem:[%s1914_s1 + $0x1f8] sm:$0xff] }
  0x24   :  { %480 = vmatpush.msra.mxu1 %v24_v57  ;;  %540 = vmatpush.msrb.mxu0 %v27_v58  ;;  %v36_v42 = vld [vmem:[%s1914_s1 + $0xa8] sm:$0xff]  ;;  %v39_v43 = vld [vmem:[%s1914_s1 + $0xc0] sm:$0xff]  ;;  %v41_v47 = vld [vmem:[%s1914_s1 + $0xd0] sm:$0xff] }
  0x25   :  { %579 = vmatpush.msrb.mxu2 %v66_v59  ;;  %599 = vmatpush.msrb.mxu3 %v67_v60  ;;  %v79_v45 = vld [vmem:[%s1914_s1 + $0x200] sm:$0xff]  ;;  %v42_v48 = vld [vmem:[%s1914_s1 + $0xd8] sm:$0xff]  ;;  %v117_v51 = vld [vmem:[%s1914_s1 + $0x330] sm:$0xff] }
  0x26   :  { %1123 = vmatmul.msk.f32.vlgmr.msra.gmra.mxu1 %vm169_vm1, %v1243_v13  ;;  %1129 = vmatmul.msk.f32.vlgmr.msrb.gmra.mxu0 %vm169_vm1, %v1243_v13  ;;  %v151_v46 = vld [vmem:[%s1914_s1 + $0x440] sm:$0x7]  ;;  %v154_v49 = vld [vmem:[%s1914_s1 + $0x458] sm:$0x7]  ;;  %v156_v52 = vld [vmem:[%s1914_s1 + $0x468] sm:$0x7] }
  0x27   :  { %1130 = vmatpush.msk.msrb.mxu1 %vm173_vm0, %v139_v61  ;;  %580 = vmatpush.msrb.mxu2 %v29_v62  ;;  %v114_v50 = vld [vmem:[%s1914_s1 + $0x318] sm:$0xff]  ;;  %v157_v53 = vld [vmem:[%s1914_s1 + $0x470] sm:$0x7]  ;;  %v80_v55 = vld [vmem:[%s1914_s1 + $0x208] sm:$0xff] }
  0x28   :  { %600 = vmatpush.msrb.mxu3 %v30_v63  ;;  %1136 = vmatpush.msk.msra.mxu0 %vm173_vm0, %v142_v0  ;;  %v77_v54 = vld [vmem:[%s1914_s1 + $0x1f0] sm:$0xff]  ;;  %v119_v56 = vld [vmem:[%s1914_s1 + $0x340] sm:$0xff]  ;;  %v120_v57 = vld [vmem:[%s1914_s1 + $0x348] sm:$0xff] }
  0x29   :  { %558 = vmatpush.msrb.mxu1 %v102_v1  ;;  %1133 = vmatmul.msk.f32.vlgmr.msrb.gmra.mxu2 %vm169_vm1, %v1243_v13  ;;  %v40_v58 = vld [vmem:[%s1914_s1 + $0xc8] sm:$0xff]  ;;  %v43_v59 = vld [vmem:[%s1914_s1 + $0xe0] sm:$0xff]  ;;  %v82_v60 = vld [vmem:[%s1914_s1 + $0x218] sm:$0xff] }
  0x2a   :  { %1135 = vmatmul.msk.f32.vlgmr.msrb.gmra.mxu3 %vm169_vm1, %v1243_v13  ;;  %618 = vmatpush.msra.mxu0 %v105_v2  ;;  %v83_v61 = vld [vmem:[%s1914_s1 + $0x220] sm:$0xff]  ;;  %v45_v63 = vld [vmem:[%s1914_s1 + $0xf0] sm:$0xff]  ;;  %v46_v0 = vld [vmem:[%s1914_s1 + $0xf8] sm:$0xff] }
  0x2b   :  { %1140 = vmatpush.msk.msra.mxu2 %vm173_vm0, %v144_v3  ;;  %1142 = vmatpush.msk.msra.mxu3 %vm173_vm0, %v145_v4  ;;  %v155_v62 = vld [vmem:[%s1914_s1 + $0x460] sm:$0x7]  ;;  %v158_v1 = vld [vmem:[%s1914_s1 + $0x478] sm:$0x7]  ;;  %v121_v3 = vld [vmem:[%s1914_s1 + $0x350] sm:$0xff] }
  0x2c   :  { %559 = vmatpush.msrb.mxu1 %v65_v5  ;;  %619 = vmatpush.msra.mxu0 %v68_v6  ;;  %v118_v2 = vld [vmem:[%s1914_s1 + $0x338] sm:$0xff]  ;;  %v160_v4 = vld [vmem:[%s1914_s1 + $0x488] sm:$0x7]  ;;  %v161_v5 = vld [vmem:[%s1914_s1 + $0x490] sm:$0x7] }
  0x2d   :  { %658 = vmatpush.msra.mxu2 %v107_v7  ;;  %678 = vmatpush.msra.mxu3 %v108_v8  ;;  %v81_v6 = vld [vmem:[%s1914_s1 + $0x210] sm:$0xff]  ;;  %v84_v7 = vld [vmem:[%s1914_s1 + $0x228] sm:$0xff]  ;;  %v123_v8 = vld [vmem:[%s1914_s1 + $0x360] sm:$0xff] }
  0x2e   :  { %560 = vmatpush.msrb.mxu1 %v28_v9  ;;  %620 = vmatpush.msra.mxu0 %v31_v10  ;;  %v124_v9 = vld [vmem:[%s1914_s1 + $0x368] sm:$0xff] }
  0x2f   :  { %659 = vmatpush.msra.mxu2 %v70_v11  ;;  %679 = vmatpush.msra.mxu3 %v71_v12  ;;  %v44_v10 = vld [vmem:[%s1914_s1 + $0xe8] sm:$0xff]  ;;  %v47_v11 = vld [vmem:[%s1914_s1 + $0x100] sm:$0xff]  ;;  %v86_v12 = vld [vmem:[%s1914_s1 + $0x238] sm:$0xff] }
  0x30   :  { %1131 = vmatmul.msk.f32.vlgmr.msrb.gmra.mxu1 %vm169_vm1, %v1243_v13  ;;  %1137 = vmatmul.msk.f32.vlgmr.msra.gmra.mxu0 %vm169_vm1, %v1243_v13 }
  0x31   :  { %1138 = vmatpush.msk.msra.mxu1 %vm173_vm0, %v143_v14  ;;  %660 = vmatpush.msra.mxu2 %v33_v15  ;;  %v87_v14 = vld [vmem:[%s1914_s1 + $0x240] sm:$0xff] }
  0x32   :  { %680 = vmatpush.msra.mxu3 %v34_v16  ;;  %1144 = vmatpush.msk.msrb.mxu0 %vm173_vm0, %v146_v17  ;;  %v159_v15 = vld [vmem:[%s1914_s1 + $0x480] sm:$0x7]  ;;  %v49_v16 = vld [vmem:[%s1914_s1 + $0x110] sm:$0xff]  ;;  %v50_v17 = vld [vmem:[%s1914_s1 + $0x118] sm:$0xff] }
  0x33   :  { %638 = vmatpush.msra.mxu1 %v106_v18  ;;  %1141 = vmatmul.msk.f32.vlgmr.msra.gmra.mxu2 %vm169_vm1, %v1243_v13  ;;  %v162_v18 = vld [vmem:[%s1914_s1 + $0x498] sm:$0x7] }
  0x34   :  { %1143 = vmatmul.msk.f32.vlgmr.msra.gmra.mxu3 %vm169_vm1, %v1243_v13  ;;  %698 = vmatpush.msrb.mxu0 %v109_v19  ;;  %v122_v19 = vld [vmem:[%s1914_s1 + $0x358] sm:$0xff] }
  0x35   :  { %1148 = vmatpush.msk.msrb.mxu2 %vm173_vm0, %v148_v20  ;;  %1150 = vmatpush.msk.msrb.mxu3 %vm173_vm0, %v149_v21  ;;  %v125_v20 = vld [vmem:[%s1914_s1 + $0x370] sm:$0xff] }
  0x36   :  { %639 = vmatpush.msra.mxu1 %v69_v22  ;;  %699 = vmatpush.msrb.mxu0 %v72_v23  ;;  %v85_v21 = vld [vmem:[%s1914_s1 + $0x230] sm:$0xff]  ;;  %v88_v22 = vld [vmem:[%s1914_s1 + $0x248] sm:$0xff] }
  0x37   :  { %738 = vmatpush.msrb.mxu2 %v111_v24  ;;  %758 = vmatpush.msrb.mxu3 %v112_v25  ;;  %v48_v23 = vld [vmem:[%s1914_s1 + $0x108] sm:$0xff]  ;;  %v51_v24 = vld [vmem:[%s1914_s1 + $0x120] sm:$0xff] }
  0x38   :  { %640 = vmatpush.msra.mxu1 %v32_v26  ;;  %700 = vmatpush.msrb.mxu0 %v35_v27 }
  0x39   :  { %739 = vmatpush.msrb.mxu2 %v74_v28  ;;  %759 = vmatpush.msrb.mxu3 %v75_v29 }
  0x3a   :  { %1139 = vmatmul.msk.f32.vlgmr.msra.gmra.mxu1 %vm169_vm1, %v1243_v13  ;;  %1145 = vmatmul.msk.f32.vlgmr.msrb.gmra.mxu0 %vm169_vm1, %v1243_v13 }
  0x3b   :  { %1146 = vmatpush.msk.msrb.mxu1 %vm173_vm0, %v147_v30  ;;  %740 = vmatpush.msrb.mxu2 %v37_v31 }
  0x3c   :  { %760 = vmatpush.msrb.mxu3 %v38_v32  ;;  %1152 = vmatpush.msk.msra.mxu0 %vm173_vm0, %v150_v33 }
  0x3d   :  { %718 = vmatpush.msrb.mxu1 %v110_v34  ;;  %1149 = vmatmul.msk.f32.vlgmr.msrb.gmra.mxu2 %vm169_vm1, %v1243_v13 }
  0x3e   :  { %1151 = vmatmul.msk.f32.vlgmr.msrb.gmra.mxu3 %vm169_vm1, %v1243_v13  ;;  %778 = vmatpush.msra.mxu0 %v113_v35 }
  0x3f   :  { %1156 = vmatpush.msk.msra.mxu2 %vm173_vm0, %v152_v36  ;;  %1158 = vmatpush.msk.msra.mxu3 %vm173_vm0, %v153_v37 }
  0x40   :  { %719 = vmatpush.msrb.mxu1 %v73_v38  ;;  %779 = vmatpush.msra.mxu0 %v76_v39 }
  0x41   :  { %818 = vmatpush.msra.mxu2 %v115_v40  ;;  %838 = vmatpush.msra.mxu3 %v116_v41 }
  0x42   :  { %720 = vmatpush.msrb.mxu1 %v36_v42  ;;  %780 = vmatpush.msra.mxu0 %v39_v43 }
  0x43   :  { %819 = vmatpush.msra.mxu2 %v78_v44  ;;  %839 = vmatpush.msra.mxu3 %v79_v45 }
  0x44   :  { %1147 = vmatmul.msk.f32.vlgmr.msrb.gmra.mxu1 %vm169_vm1, %v1243_v13  ;;  %1153 = vmatmul.msk.f32.vlgmr.msra.gmra.mxu0 %vm169_vm1, %v1243_v13 }
  0x45   :  { %1154 = vmatpush.msk.msra.mxu1 %vm173_vm0, %v151_v46  ;;  %820 = vmatpush.msra.mxu2 %v41_v47 }
  0x46   :  { %840 = vmatpush.msra.mxu3 %v42_v48  ;;  %1160 = vmatpush.msk.msrb.mxu0 %vm173_vm0, %v154_v49 }
  0x47   :  { %798 = vmatpush.msra.mxu1 %v114_v50  ;;  %1157 = vmatmul.msk.f32.vlgmr.msra.gmra.mxu2 %vm169_vm1, %v1243_v13 }
  0x48   :  { %1159 = vmatmul.msk.f32.vlgmr.msra.gmra.mxu3 %vm169_vm1, %v1243_v13  ;;  %858 = vmatpush.msrb.mxu0 %v117_v51 }
  0x49   :  { %1164 = vmatpush.msk.msrb.mxu2 %vm173_vm0, %v156_v52  ;;  %1166 = vmatpush.msk.msrb.mxu3 %vm173_vm0, %v157_v53 }
  0x4a   :  { %799 = vmatpush.msra.mxu1 %v77_v54  ;;  %859 = vmatpush.msrb.mxu0 %v80_v55 }
  0x4b   :  { %898 = vmatpush.msrb.mxu2 %v119_v56  ;;  %918 = vmatpush.msrb.mxu3 %v120_v57 }
  0x4c   :  { %800 = vmatpush.msra.mxu1 %v40_v58  ;;  %860 = vmatpush.msrb.mxu0 %v43_v59 }
  0x4d   :  { %899 = vmatpush.msrb.mxu2 %v82_v60  ;;  %919 = vmatpush.msrb.mxu3 %v83_v61 }
  0x4e   :  { %1155 = vmatmul.msk.f32.vlgmr.msra.gmra.mxu1 %vm169_vm1, %v1243_v13  ;;  %1161 = vmatmul.msk.f32.vlgmr.msrb.gmra.mxu0 %vm169_vm1, %v1243_v13 }
  0x4f   :  { %1162 = vmatpush.msk.msrb.mxu1 %vm173_vm0, %v155_v62  ;;  %900 = vmatpush.msrb.mxu2 %v45_v63 }
  0x50   :  { %920 = vmatpush.msrb.mxu3 %v46_v0  ;;  %1168 = vmatpush.msk.msra.mxu0 %vm173_vm0, %v158_v1 }
  0x51   :  { %878 = vmatpush.msrb.mxu1 %v118_v2  ;;  %1165 = vmatmul.msk.f32.vlgmr.msrb.gmra.mxu2 %vm169_vm1, %v1243_v13 }
  0x52   :  { %1167 = vmatmul.msk.f32.vlgmr.msrb.gmra.mxu3 %vm169_vm1, %v1243_v13  ;;  %938 = vmatpush.msra.mxu0 %v121_v3 }
  0x53   :  { %1172 = vmatpush.msk.msra.mxu2 %vm173_vm0, %v160_v4  ;;  %1174 = vmatpush.msk.msra.mxu3 %vm173_vm0, %v161_v5 }
  0x54   :  { %879 = vmatpush.msrb.mxu1 %v81_v6  ;;  %939 = vmatpush.msra.mxu0 %v84_v7 }
  0x55   :  { %978 = vmatpush.msra.mxu2 %v123_v8  ;;  %998 = vmatpush.msra.mxu3 %v124_v9 }
  0x56   :  { %880 = vmatpush.msrb.mxu1 %v44_v10  ;;  %940 = vmatpush.msra.mxu0 %v47_v11 }
  0x57   :  { %979 = vmatpush.msra.mxu2 %v86_v12  ;;  %999 = vmatpush.msra.mxu3 %v87_v14 }
  0x58   :  { %1163 = vmatmul.msk.f32.vlgmr.msrb.gmra.mxu1 %vm169_vm1, %v1243_v13  ;;  %1169 = vmatmul.msk.f32.vlgmr.msra.gmra.mxu0 %vm169_vm1, %v1243_v13 }
  0x59   :  { %1170 = vmatpush.msk.msra.mxu1 %vm173_vm0, %v159_v15  ;;  %980 = vmatpush.msra.mxu2 %v49_v16 }
  0x5a   :  { %1000 = vmatpush.msra.mxu3 %v50_v17  ;;  %1176 = vmatpush.msk.msrb.mxu0 %vm173_vm0, %v162_v18 }
  0x5b   :  { %958 = vmatpush.msra.mxu1 %v122_v19  ;;  %1173 = vmatmul.msk.f32.vlgmr.msra.gmra.mxu2 %vm169_vm1, %v1243_v13 }
  0x5c   :  { %1175 = vmatmul.msk.f32.vlgmr.msra.gmra.mxu3 %vm169_vm1, %v1243_v13  ;;  %1018 = vmatpush.msrb.mxu0 %v125_v20 }
  0x5d   :  { %959 = vmatpush.msra.mxu1 %v85_v21 }
  0x5e   :  { %1019 = vmatpush.msrb.mxu0 %v88_v22 }
  0x5f   :  { %960 = vmatpush.msra.mxu1 %v48_v23 }
  0x60   :  { %1020 = vmatpush.msrb.mxu0 %v51_v24  ;;  %1171 = vmatmul.msk.f32.vlgmr.msra.gmra.mxu1 %vm169_vm1, %v1243_v13 }
  0x61   :  { %1177 = vmatmul.msk.f32.vlgmr.msrb.gmra.mxu0 %vm169_vm1, %v1243_v13 }
  0x86   :  { %v302_v25 = vpop.f32.mrf.mxu0 }
  0x89   :  { %v1764_v26 = vpop.permute.xlu0 %166 }
  0x8a   :  { %v303_v27 = vadd.f32 %v302_v25, %v1764_v26 }
  0x8c   :  { %v1025_v28 = vmax.f32 %v303_v27, 0.0 }
  0x8d   :  { %v342_v29 = vpop.f32.mrf.mxu2 }
  0x8e   :  { %1062 = vst [vmem:[%s1917_s3] sm:$0x3f] %v1025_v28  ;;  %v343_v30 = vadd.f32 %v342_v29, %v1764_v26  ;;  %v362_v31 = vpop.f32.mrf.mxu3  ;;  %v382_v32 = vpop.f32.mrf.mxu0 }
  0x8f   :  { %v322_v33 = vpop.f32.mrf.mxu1  ;;  %v363_v34 = vadd.f32 %v362_v31, %v1764_v26  ;;  %v383_v13 = vadd.f32 %v382_v32, %v1764_v26 }
  0x90   :  { %v323_v35 = vadd.f32 %v322_v33, %v1764_v26  ;;  %v1027_v36 = vmax.f32 %v343_v30, 0.0 }
  0x91   :  { %v1028_v37 = vmax.f32 %v363_v34, 0.0  ;;  %v1029_v38 = vmax.f32 %v383_v13, 0.0 }
  0x92   :  { %v1026_v39 = vmax.f32 %v323_v35, 0.0  ;;  %1064 = vst [vmem:[%s1917_s3 + $0x10] sm:$0x3f] %v1027_v36 }
  0x93   :  { %1065 = vst [vmem:[%s1917_s3 + $0x18] sm:$0x3f] %v1028_v37 }
  0x94   :  { %1063 = vst [vmem:[%s1917_s3 + $0x8] sm:$0x3f] %v1026_v39 }
  0x95   :  { %1066 = vst [vmem:[%s1917_s3 + $0x20] sm:$0x3f] %v1029_v38 }
  0x97   :  { %v422_v40 = vpop.f32.mrf.mxu2 }
  0x98   :  { %v423_v41 = vadd.f32 %v422_v40, %v1764_v26  ;;  %v442_v42 = vpop.f32.mrf.mxu3 }
  0x99   :  { %v402_v43 = vpop.f32.mrf.mxu1  ;;  %v443_v44 = vadd.f32 %v442_v42, %v1764_v26  ;;  %v462_v45 = vpop.f32.mrf.mxu0 }
  0x9a   :  { %v403_v46 = vadd.f32 %v402_v43, %v1764_v26  ;;  %v1031_v47 = vmax.f32 %v423_v41, 0.0  ;;  %v463_v48 = vadd.f32 %v462_v45, %v1764_v26 }
  0x9b   :  { %v1032_v49 = vmax.f32 %v443_v44, 0.0 }
  0x9c   :  { %v1030_v50 = vmax.f32 %v403_v46, 0.0  ;;  %1068 = vst [vmem:[%s1917_s3 + $0x30] sm:$0x3f] %v1031_v47  ;;  %v1033_v51 = vmax.f32 %v463_v48, 0.0 }
  0x9d   :  { %1069 = vst [vmem:[%s1917_s3 + $0x38] sm:$0x3f] %v1032_v49 }
  0x9e   :  { %1067 = vst [vmem:[%s1917_s3 + $0x28] sm:$0x3f] %v1030_v50 }
  0x9f   :  { %1070 = vst [vmem:[%s1917_s3 + $0x40] sm:$0x3f] %v1033_v51 }
  0xa2   :  { %v502_v52 = vpop.f32.mrf.mxu2 }
  0xa3   :  { %v482_v53 = vpop.f32.mrf.mxu1  ;;  %v503_v54 = vadd.f32 %v502_v52, %v1764_v26  ;;  %v522_v55 = vpop.f32.mrf.mxu3 }
  0xa4   :  { %v483_v56 = vadd.f32 %v482_v53, %v1764_v26  ;;  %v523_v57 = vadd.f32 %v522_v55, %v1764_v26  ;;  %v542_v58 = vpop.f32.mrf.mxu0 }
  0xa5   :  { %v1035_v59 = vmax.f32 %v503_v54, 0.0  ;;  %v543_v60 = vadd.f32 %v542_v58, %v1764_v26 }
  0xa6   :  { %v1034_v61 = vmax.f32 %v483_v56, 0.0  ;;  %v1036_v62 = vmax.f32 %v523_v57, 0.0 }
  0xa7   :  { %1072 = vst [vmem:[%s1917_s3 + $0x50] sm:$0x3f] %v1035_v59  ;;  %v1037_v63 = vmax.f32 %v543_v60, 0.0 }
  0xa8   :  { %1071 = vst [vmem:[%s1917_s3 + $0x48] sm:$0x3f] %v1034_v61 }
  0xa9   :  { %1073 = vst [vmem:[%s1917_s3 + $0x58] sm:$0x3f] %v1036_v62 }
  0xaa   :  { %1074 = vst [vmem:[%s1917_s3 + $0x60] sm:$0x3f] %v1037_v63 }
  0xac   :  { %v582_v0 = vpop.f32.mrf.mxu2 }
  0xad   :  { %v562_v1 = vpop.f32.mrf.mxu1  ;;  %v583_v2 = vadd.f32 %v582_v0, %v1764_v26  ;;  %v602_v3 = vpop.f32.mrf.mxu3 }
  0xae   :  { %v563_v4 = vadd.f32 %v562_v1, %v1764_v26  ;;  %v603_v5 = vadd.f32 %v602_v3, %v1764_v26  ;;  %v622_v6 = vpop.f32.mrf.mxu0 }
  0xaf   :  { %v1039_v7 = vmax.f32 %v583_v2, 0.0  ;;  %v623_v8 = vadd.f32 %v622_v6, %v1764_v26 }
  0xb0   :  { %v1038_v9 = vmax.f32 %v563_v4, 0.0  ;;  %v1040_v10 = vmax.f32 %v603_v5, 0.0 }
  0xb1   :  { %1076 = vst [vmem:[%s1917_s3 + $0x70] sm:$0x3f] %v1039_v7  ;;  %v1041_v11 = vmax.f32 %v623_v8, 0.0 }
  0xb2   :  { %1075 = vst [vmem:[%s1917_s3 + $0x68] sm:$0x3f] %v1038_v9 }
  0xb3   :  { %1077 = vst [vmem:[%s1917_s3 + $0x78] sm:$0x3f] %v1040_v10 }
  0xb4   :  { %1078 = vst [vmem:[%s1917_s3 + $0x80] sm:$0x3f] %v1041_v11 }
  0xb6   :  { %v662_v12 = vpop.f32.mrf.mxu2 }
  0xb7   :  { %v642_v14 = vpop.f32.mrf.mxu1  ;;  %v663_v15 = vadd.f32 %v662_v12, %v1764_v26  ;;  %v682_v16 = vpop.f32.mrf.mxu3 }
  0xb8   :  { %v643_v17 = vadd.f32 %v642_v14, %v1764_v26  ;;  %v683_v18 = vadd.f32 %v682_v16, %v1764_v26  ;;  %v702_v19 = vpop.f32.mrf.mxu0 }
  0xb9   :  { %v1043_v20 = vmax.f32 %v663_v15, 0.0  ;;  %v703_v21 = vadd.f32 %v702_v19, %v1764_v26 }
  0xba   :  { %v1042_v22 = vmax.f32 %v643_v17, 0.0  ;;  %v1044_v23 = vmax.f32 %v683_v18, 0.0 }
  0xbb   :  { %1080 = vst [vmem:[%s1917_s3 + $0x90] sm:$0x3f] %v1043_v20  ;;  %v1045_v24 = vmax.f32 %v703_v21, 0.0 }
  0xbc   :  { %1079 = vst [vmem:[%s1917_s3 + $0x88] sm:$0x3f] %v1042_v22 }
  0xbd   :  { %1081 = vst [vmem:[%s1917_s3 + $0x98] sm:$0x3f] %v1044_v23 }
  0xbe   :  { %1082 = vst [vmem:[%s1917_s3 + $0xa0] sm:$0x3f] %v1045_v24 }
  0xc0   :  { %v742_v25 = vpop.f32.mrf.mxu2 }
  0xc1   :  { %v722_v27 = vpop.f32.mrf.mxu1  ;;  %v743_v28 = vadd.f32 %v742_v25, %v1764_v26  ;;  %v762_v29 = vpop.f32.mrf.mxu3 }
  0xc2   :  { %v723_v30 = vadd.f32 %v722_v27, %v1764_v26  ;;  %v763_v31 = vadd.f32 %v762_v29, %v1764_v26  ;;  %v782_v32 = vpop.f32.mrf.mxu0 }
  0xc3   :  { %v1047_v33 = vmax.f32 %v743_v28, 0.0  ;;  %v783_v34 = vadd.f32 %v782_v32, %v1764_v26 }
  0xc4   :  { %v1046_v13 = vmax.f32 %v723_v30, 0.0  ;;  %v1048_v35 = vmax.f32 %v763_v31, 0.0 }
  0xc5   :  { %1084 = vst [vmem:[%s1917_s3 + $0xb0] sm:$0x3f] %v1047_v33  ;;  %v1049_v36 = vmax.f32 %v783_v34, 0.0 }
  0xc6   :  { %1083 = vst [vmem:[%s1917_s3 + $0xa8] sm:$0x3f] %v1046_v13 }
  0xc7   :  { %1085 = vst [vmem:[%s1917_s3 + $0xb8] sm:$0x3f] %v1048_v35 }
  0xc8   :  { %1086 = vst [vmem:[%s1917_s3 + $0xc0] sm:$0x3f] %v1049_v36 }
  0xca   :  { %v822_v37 = vpop.f32.mrf.mxu2 }
  0xcb   :  { %v802_v38 = vpop.f32.mrf.mxu1  ;;  %v823_v39 = vadd.f32 %v822_v37, %v1764_v26  ;;  %v842_v40 = vpop.f32.mrf.mxu3 }
  0xcc   :  { %v803_v41 = vadd.f32 %v802_v38, %v1764_v26  ;;  %v843_v42 = vadd.f32 %v842_v40, %v1764_v26  ;;  %v862_v43 = vpop.f32.mrf.mxu0 }
  0xcd   :  { %v1051_v44 = vmax.f32 %v823_v39, 0.0  ;;  %v863_v45 = vadd.f32 %v862_v43, %v1764_v26 }
  0xce   :  { %v1050_v46 = vmax.f32 %v803_v41, 0.0  ;;  %v1052_v47 = vmax.f32 %v843_v42, 0.0 }
  0xcf   :  { %1088 = vst [vmem:[%s1917_s3 + $0xd0] sm:$0x3f] %v1051_v44  ;;  %v1053_v48 = vmax.f32 %v863_v45, 0.0 }
  0xd0   :  { %1087 = vst [vmem:[%s1917_s3 + $0xc8] sm:$0x3f] %v1050_v46 }
  0xd1   :  { %1089 = vst [vmem:[%s1917_s3 + $0xd8] sm:$0x3f] %v1052_v47 }
  0xd2   :  { %1090 = vst [vmem:[%s1917_s3 + $0xe0] sm:$0x3f] %v1053_v48 }
  0xd4   :  { %v902_v49 = vpop.f32.mrf.mxu2 }
  0xd5   :  { %v882_v50 = vpop.f32.mrf.mxu1  ;;  %v903_v51 = vadd.f32 %v902_v49, %v1764_v26  ;;  %v922_v52 = vpop.f32.mrf.mxu3 }
  0xd6   :  { %v883_v53 = vadd.f32 %v882_v50, %v1764_v26  ;;  %v923_v54 = vadd.f32 %v922_v52, %v1764_v26  ;;  %v942_v55 = vpop.f32.mrf.mxu0 }
  0xd7   :  { %v1055_v56 = vmax.f32 %v903_v51, 0.0  ;;  %v943_v57 = vadd.f32 %v942_v55, %v1764_v26 }
  0xd8   :  { %v1054_v58 = vmax.f32 %v883_v53, 0.0  ;;  %v1056_v59 = vmax.f32 %v923_v54, 0.0 }
  0xd9   :  { %1092 = vst [vmem:[%s1917_s3 + $0xf0] sm:$0x3f] %v1055_v56  ;;  %v1057_v60 = vmax.f32 %v943_v57, 0.0 }
  0xda   :  { %1091 = vst [vmem:[%s1917_s3 + $0xe8] sm:$0x3f] %v1054_v58 }
  0xdb   :  { %1093 = vst [vmem:[%s1917_s3 + $0xf8] sm:$0x3f] %v1056_v59 }
  0xdc   :  { %1094 = vst [vmem:[%s1917_s3 + $0x100] sm:$0x3f] %v1057_v60 }
  0xdd   :  { %v962_v61 = vpop.f32.mrf.mxu1 }
  0xde   :  { %v963_v62 = vadd.f32 %v962_v61, %v1764_v26  ;;  %v982_v63 = vpop.f32.mrf.mxu2  ;;  %v1022_v0 = vpop.f32.mrf.mxu0 }
  0xdf   :  { %v983_v1 = vadd.f32 %v982_v63, %v1764_v26  ;;  %v1002_v2 = vpop.f32.mrf.mxu3  ;;  %v1023_v3 = vadd.f32 %v1022_v0, %v1764_v26 }
  0xe0   :  { %v1058_v4 = vmax.f32 %v963_v62, 0.0  ;;  %v1003_v5 = vadd.f32 %v1002_v2, %v1764_v26 }
  0xe1   :  { %v1059_v6 = vmax.f32 %v983_v1, 0.0  ;;  %v1061_v7 = vmax.f32 %v1023_v3, 0.0 }
  0xe2   :  { %1095 = vst [vmem:[%s1917_s3 + $0x108] sm:$0x3f] %v1058_v4  ;;  %v1060_v8 = vmax.f32 %v1003_v5, 0.0 }
  0xe3   :  { %1096 = vst [vmem:[%s1917_s3 + $0x110] sm:$0x3f] %v1059_v6 }
  0xe4   :  { %1097 = vst [vmem:[%s1917_s3 + $0x118] sm:$0x3f] %v1060_v8 }
  0xe5   :  { %1099 = vst.msk [vmem:[%s1917_s3 + $0x120] sm:$0x3f] %vm1098_vm2, %v1061_v7 }

// kernel: comn_01_forward.4
= control target key start
LH: loop header
LB: loop body
LE: loop exit
PB: predicated region body
PF: predicated region fallthrough
CT: control target
= control target key end

     0   :  { %vm113_vm0 = vcmask 1045504   ;;  %vm106_vm1 = vcmask 179200   ;;  %vm321_vm2 = vcmask 818176   ;;  %s680_s1 = inlined_call_operand.vmem [shape: f32[150,484], index: 1, kind: input, shape index: {}]   ;;  %s681_s0 = inlined_call_operand.vmem [shape: f32[16,150], index: 0, kind: input, shape index: {}]   ;;  %s682_s2 = inlined_call_operand.vmem [shape: f32[16,1], index: 2, kind: input, shape index: {}]   ;;  %s683_s3 = inlined_call_operand.vmem [shape: f32[16,484], index: 3, kind: output, shape index: {}]  }
   0x1   :  { %v78_v0 = vld [vmem:[%s680_s1 + $0x1e0] sm:$0xff]  ;;  %v79_v2 = vld [vmem:[%s680_s1 + $0x1e8] sm:$0xff]  ;;  %v80_v12 = vld [vmem:[%s680_s1 + $0x1f0] sm:$0xff] }
   0x2   :  { %v90_v1 = vld [vmem:[%s680_s1 + $0x240] sm:$0x3f]  ;;  %126 = vmatpush.msra.mxu0 %v78_v0  ;;  %v385_v3 = vld [vmem:[%s680_s1 + $0x248] sm:$0x3f]  ;;  %172 = vmatpush.msra.mxu2 %v79_v2  ;;  %v92_v13 = vld [vmem:[%s680_s1 + $0x250] sm:$0x3f] }
   0x3   :  { %331 = vmatpush.msk.msra.mxu1 %vm113_vm0, %v90_v1  ;;  %v74_v4 = vld [vmem:[%s680_s1 + $0x1c0] sm:$0xff]  ;;  %343 = vmatpush.msk.msra.mxu3 %vm113_vm0, %v385_v3  ;;  %v75_v6 = vld [vmem:[%s680_s1 + $0x1c8] sm:$0xff]  ;;  %v76_v16 = vld [vmem:[%s680_s1 + $0x1d0] sm:$0xff] }
   0x4   :  { %v86_v5 = vld [vmem:[%s680_s1 + $0x220] sm:$0xff]  ;;  %v401_v7 = vld [vmem:[%s680_s1 + $0x228] sm:$0xff]  ;;  %127 = vmatpush.msra.mxu0 %v74_v4  ;;  %173 = vmatpush.msra.mxu2 %v75_v6  ;;  %v88_v17 = vld [vmem:[%s680_s1 + $0x230] sm:$0xff] }
   0x5   :  { %v70_v8 = vld [vmem:[%s680_s1 + $0x1a0] sm:$0xff]  ;;  %163 = vmatpush.msra.mxu1 %v86_v5  ;;  %v71_v10 = vld [vmem:[%s680_s1 + $0x1a8] sm:$0xff]  ;;  %344 = vmatpush.msra.mxu3 %v401_v7  ;;  %v72_v20 = vld [vmem:[%s680_s1 + $0x1b0] sm:$0xff] }
   0x6   :  { %v82_v9 = vld [vmem:[%s680_s1 + $0x200] sm:$0xff]  ;;  %v415_v11 = vld [vmem:[%s680_s1 + $0x208] sm:$0xff]  ;;  %128 = vmatpush.msra.mxu0 %v70_v8  ;;  %174 = vmatpush.msra.mxu2 %v71_v10  ;;  %v84_v21 = vld [vmem:[%s680_s1 + $0x210] sm:$0xff] }
   0x7   :  { %164 = vmatpush.msra.mxu1 %v82_v9  ;;  %v66_v14 = vld [vmem:[%s680_s1 + $0x180] sm:$0xff]  ;;  %v67_v15 = vld [vmem:[%s680_s1 + $0x188] sm:$0xff]  ;;  %345 = vmatpush.msra.mxu3 %v415_v11  ;;  %v459_v24 = vld [vmem:[%s681_s0 + $0x18] sm:$0xff] }
   0x8   :  { %v62_v18 = vld [vmem:[%s680_s1 + $0x160] sm:$0xff]  ;;  %v63_v19 = vld [vmem:[%s680_s1 + $0x168] sm:$0xff]  ;;  %129 = vmatpush.msra.mxu0 %v66_v14  ;;  %175 = vmatpush.msra.mxu2 %v67_v15  ;;  %v68_v25 = vld [vmem:[%s680_s1 + $0x190] sm:$0xff] }
   0x9   :  { %218 = vmatpush.msrb.mxu1 %v80_v12  ;;  %337 = vmatpush.msk.msrb.mxu3 %vm113_vm0, %v92_v13  ;;  %v58_v22 = vld [vmem:[%s680_s1 + $0x140] sm:$0xff]  ;;  %v59_v23 = vld [vmem:[%s680_s1 + $0x148] sm:$0xff]  ;;  %v81_v26 = vld [vmem:[%s680_s1 + $0x1f8] sm:$0xff]  ;;  %v351_v13 = vmov 0  }
   0xa   :  { %130 = vmatpush.msra.mxu0 %v62_v18  ;;  %176 = vmatpush.msra.mxu2 %v63_v19  ;;  %v54_v27 = vld [vmem:[%s680_s1 + $0x120] sm:$0xff]  ;;  %v55_v28 = vld [vmem:[%s680_s1 + $0x128] sm:$0xff]  ;;  %v64_v29 = vld [vmem:[%s680_s1 + $0x170] sm:$0xff] }
   0xb   :  { %219 = vmatpush.msrb.mxu1 %v76_v16  ;;  %255 = vmatpush.msrb.mxu3 %v88_v17  ;;  %v77_v30 = vld [vmem:[%s680_s1 + $0x1d8] sm:$0xff]  ;;  %v50_v31 = vld [vmem:[%s680_s1 + $0x100] sm:$0xff]  ;;  %v51_v32 = vld [vmem:[%s680_s1 + $0x108] sm:$0xff] }
   0xc   :  { %131 = vmatpush.msra.mxu0 %v58_v22  ;;  %177 = vmatpush.msra.mxu2 %v59_v23  ;;  %v60_v33 = vld [vmem:[%s680_s1 + $0x150] sm:$0xff]  ;;  %v73_v34 = vld [vmem:[%s680_s1 + $0x1b8] sm:$0xff]  ;;  %v46_v35 = vld [vmem:[%s680_s1 + $0xe0] sm:$0xff] }
   0xd   :  { %220 = vmatpush.msrb.mxu1 %v72_v20  ;;  %256 = vmatpush.msrb.mxu3 %v84_v21  ;;  %v47_v36 = vld [vmem:[%s680_s1 + $0xe8] sm:$0xff]  ;;  %v56_v37 = vld [vmem:[%s680_s1 + $0x130] sm:$0xff]  ;;  %v69_v38 = vld [vmem:[%s680_s1 + $0x198] sm:$0xff] }
   0xe   :  { %336 = vmatmul.msk.f32.vlgmr.msra.gmra.mxu3 %vm106_vm1, %v459_v24  ;;  %132 = vmatpush.msra.mxu0 %v54_v27  ;;  %v42_v39 = vld [vmem:[%s680_s1 + $0xc0] sm:$0xff]  ;;  %v43_v40 = vld [vmem:[%s680_s1 + $0xc8] sm:$0xff]  ;;  %v52_v41 = vld [vmem:[%s680_s1 + $0x110] sm:$0xff] }
   0xf   :  { %221 = vmatpush.msrb.mxu1 %v68_v25  ;;  %264 = vmatpush.msra.mxu3 %v81_v26  ;;  %v65_v42 = vld [vmem:[%s680_s1 + $0x178] sm:$0xff]  ;;  %v38_v43 = vld [vmem:[%s680_s1 + $0xa0] sm:$0xff]  ;;  %v523_v44 = vld [vmem:[%s681_s0 + $0x8] sm:$0xff] }
  0x10   :  { %178 = vmatpush.msra.mxu2 %v55_v28  ;;  %133 = vmatpush.msra.mxu0 %v50_v31  ;;  %v39_v45 = vld [vmem:[%s680_s1 + $0xa8] sm:$0xff]  ;;  %v61_v46 = vld [vmem:[%s680_s1 + $0x158] sm:$0xff]  ;;  %v48_v47 = vld [vmem:[%s680_s1 + $0xf0] sm:$0xff] }
  0x11   :  { %222 = vmatpush.msrb.mxu1 %v64_v29  ;;  %265 = vmatpush.msra.mxu3 %v77_v30  ;;  %v34_v48 = vld [vmem:[%s680_s1 + $0x80] sm:$0xff]  ;;  %v35_v49 = vld [vmem:[%s680_s1 + $0x88] sm:$0xff]  ;;  %v57_v50 = vld [vmem:[%s680_s1 + $0x138] sm:$0xff] }
  0x12   :  { %179 = vmatpush.msra.mxu2 %v51_v32  ;;  %134 = vmatpush.msra.mxu0 %v46_v35  ;;  %v44_v51 = vld [vmem:[%s680_s1 + $0xd0] sm:$0xff]  ;;  %v30_v52 = vld [vmem:[%s680_s1 + $0x60] sm:$0xff]  ;;  %v31_v53 = vld [vmem:[%s680_s1 + $0x68] sm:$0xff] }
  0x13   :  { %223 = vmatpush.msrb.mxu1 %v60_v33  ;;  %266 = vmatpush.msra.mxu3 %v73_v34  ;;  %v53_v54 = vld [vmem:[%s680_s1 + $0x118] sm:$0xff]  ;;  %v40_v55 = vld [vmem:[%s680_s1 + $0xb0] sm:$0xff]  ;;  %v26_v56 = vld [vmem:[%s680_s1 + $0x40] sm:$0xff] }
  0x14   :  { %180 = vmatpush.msra.mxu2 %v47_v36  ;;  %135 = vmatpush.msra.mxu0 %v42_v39  ;;  %v27_v57 = vld [vmem:[%s680_s1 + $0x48] sm:$0xff]  ;;  %v49_v58 = vld [vmem:[%s680_s1 + $0xf8] sm:$0xff]  ;;  %v36_v59 = vld [vmem:[%s680_s1 + $0x90] sm:$0xff] }
  0x15   :  { %224 = vmatpush.msrb.mxu1 %v56_v37  ;;  %267 = vmatpush.msra.mxu3 %v69_v38  ;;  %v22_v60 = vld [vmem:[%s680_s1 + $0x20] sm:$0xff]  ;;  %v23_v61 = vld [vmem:[%s680_s1 + $0x28] sm:$0xff]  ;;  %v45_v62 = vld [vmem:[%s680_s1 + $0xd8] sm:$0xff] }
  0x16   :  { %181 = vmatpush.msra.mxu2 %v43_v40  ;;  %136 = vmatpush.msra.mxu0 %v38_v43  ;;  %v32_v63 = vld [vmem:[%s680_s1 + $0x70] sm:$0xff]  ;;  %v18_v0 = vld [vmem:[%s680_s1] sm:$0xff]  ;;  %v19_v1 = vld [vmem:[%s680_s1 + $0x8] sm:$0xff] }
  0x17   :  { %225 = vmatpush.msrb.mxu1 %v52_v41  ;;  %268 = vmatpush.msra.mxu3 %v65_v42  ;;  %v41_v2 = vld [vmem:[%s680_s1 + $0xb8] sm:$0xff]  ;;  %v14_v4 = vld [vmem:[%s681_s0] sm:$0xff]  ;;  %v28_v5 = vld [vmem:[%s680_s1 + $0x50] sm:$0xff] }
  0x18   :  { %332 = vmatmul.msk.f32.vlgmr.msra.gmra.mxu1 %vm106_vm1, %v523_v44  ;;  %182 = vmatpush.msra.mxu2 %v39_v45  ;;  %v37_v6 = vld [vmem:[%s680_s1 + $0x98] sm:$0xff]  ;;  %v24_v8 = vld [vmem:[%s680_s1 + $0x30] sm:$0xff]  ;;  %v94_v16 = vld [vmem:[%s682_s2] sm:$0xff] }
  0x19   :  { %269 = vmatpush.msra.mxu3 %v61_v46  ;;  %226 = vmatpush.msrb.mxu1 %v48_v47  ;;  %v33_v9 = vld [vmem:[%s680_s1 + $0x78] sm:$0xff]  ;;  %v20_v10 = vld [vmem:[%s680_s1 + $0x10] sm:$0xff]  ;;  %v95_v19 = vld [vmem:[%s682_s2 + $0x8] sm:$0xff] }
  0x1a   :  { %137 = vmatpush.msra.mxu0 %v34_v48  ;;  %183 = vmatpush.msra.mxu2 %v35_v49  ;;  %v29_v12 = vld [vmem:[%s680_s1 + $0x58] sm:$0xff]  ;;  %v16_v15 = vld [vmem:[%s681_s0 + $0x10] sm:$0xff] }
  0x1b   :  { %270 = vmatpush.msra.mxu3 %v57_v50  ;;  %227 = vmatpush.msrb.mxu1 %v44_v51  ;;  %v93_v14 = vld [vmem:[%s680_s1 + $0x258] sm:$0x3f] }
  0x1c   :  { %138 = vmatpush.msra.mxu0 %v30_v52  ;;  %184 = vmatpush.msra.mxu2 %v31_v53  ;;  %v21_v17 = vld [vmem:[%s680_s1 + $0x18] sm:$0xff] }
  0x1d   :  { %271 = vmatpush.msra.mxu3 %v53_v54  ;;  %228 = vmatpush.msrb.mxu1 %v40_v55  ;;  %v85_v18 = vld [vmem:[%s680_s1 + $0x218] sm:$0xff] }
  0x1e   :  { %338 = vmatmul.msk.f32.vlgmr.msrb.gmra.mxu3 %vm106_vm1, %v523_v44  ;;  %139 = vmatpush.msra.mxu0 %v26_v56 }
  0x1f   :  { %185 = vmatpush.msra.mxu2 %v27_v57  ;;  %272 = vmatpush.msra.mxu3 %v49_v58 }
  0x20   :  { %229 = vmatpush.msrb.mxu1 %v36_v59  ;;  %140 = vmatpush.msra.mxu0 %v22_v60 }
  0x21   :  { %333 = vmatmul.msk.f32.gmra.mxu1 %vm106_vm1, %v459_v24  ;;  %186 = vmatpush.msra.mxu2 %v23_v61 }
  0x22   :  { %273 = vmatpush.msra.mxu3 %v45_v62  ;;  %230 = vmatpush.msrb.mxu1 %v32_v63 }
  0x23   :  { %141 = vmatpush.msra.mxu0 %v18_v0  ;;  %187 = vmatpush.msra.mxu2 %v19_v1 }
  0x24   :  { %274 = vmatpush.msra.mxu3 %v41_v2  ;;  %142 = vmatmul.f32.vlgmr.msra.gmra.mxu0 %v14_v4 }
  0x25   :  { %188 = vmatmul.f32.vlgmr.msra.gmra.mxu2 %v14_v4  ;;  %231 = vmatpush.msrb.mxu1 %v28_v5 }
  0x26   :  { %275 = vmatpush.msra.mxu3 %v37_v6  ;;  %334 = vmatpush.msk.msrb.mxu2 %vm113_vm0, %v385_v3  ;;  %v25_v3 = vld [vmem:[%s680_s1 + $0x38] sm:$0xff] }
  0x27   :  { %232 = vmatpush.msrb.mxu1 %v24_v8  ;;  %339 = vmatmul.msk.f32.gmra.mxu3 %vm106_vm1, %v459_v24 }
  0x28   :  { %276 = vmatpush.msra.mxu3 %v33_v9  ;;  %350 = vset.pattern.permute.xlu0 %v351_v13 }
  0x29   :  { %233 = vmatpush.msrb.mxu1 %v20_v10  ;;  %209 = vmatpush.msrb.mxu2 %v401_v7  ;;  %v89_v7 = vld [vmem:[%s680_s1 + $0x238] sm:$0xff] }
  0x2a   :  { %234 = vmatmul.f32.vlgmr.msrb.gmra.mxu1 %v14_v4  ;;  %277 = vmatpush.msra.mxu3 %v29_v12 }
  0x2b   :  { %340 = vmatpush.msk.msrb.mxu0 %vm113_vm0, %v93_v14  ;;  %346 = vmatpush.msk.msra.mxu1 %vm113_vm0, %v93_v14 }
  0x2c   :  { %278 = vmatpush.msra.mxu3 %v25_v3  ;;  %145 = vmatmul.f32.gmra.mxu0 %v16_v15 }
  0x2d   :  { %191 = vmatmul.f32.gmra.mxu2 %v16_v15  ;;  %98 = vperm.xlu0 %350, %v94_v16  }
  0x2e   :  { %279 = vmatpush.msra.mxu3 %v21_v17  ;;  %210 = vmatpush.msrb.mxu2 %v415_v11 }
  0x2f   :  { %280 = vmatmul.f32.vlgmr.msra.gmra.mxu3 %v14_v4  ;;  %301 = vmatpush.msrb.mxu0 %v89_v7 }
  0x30   :  { %347 = vmatpush.msra.mxu1 %v89_v7 }
  0x31   :  { %302 = vmatpush.msrb.mxu0 %v85_v18 }
  0x32   :  { %237 = vmatmul.f32.gmra.mxu1 %v16_v15 }
  0x33   :  { %348 = vmatpush.msra.mxu1 %v85_v18 }
  0x34   :  { %341 = vmatmul.msk.f32.vlgmr.msrb.gmra.mxu0 %vm106_vm1, %v523_v44 }
  0x35   :  { %335 = vmatmul.msk.f32.vlgmr.msrb.gmra.mxu2 %vm106_vm1, %v523_v44  ;;  %103 = vperm.xlu0 %350, %v95_v19  }
  0x37   :  { %283 = vmatmul.f32.gmra.mxu3 %v16_v15 }
  0x3a   :  { %342 = vmatmul.msk.f32.vlgmr.msra.gmra.mxu1 %vm106_vm1, %v459_v24 }
  0x91   :  { %v215_v20 = vpop.f32.mrf.mxu3 }
  0x95   :  { %v166_v11 = vpop.f32.mrf.mxu1 }
  0x9e   :  { %v169_v21 = vpop.f32.mrf.mxu1 }
  0x9f   :  { %v99_v22 = vpop.permute.xlu0 %98 }
  0xa1   :  { %v143_v23 = vpop.f32.mrf.mxu0  ;;  %v258_v25 = vpop.f32.mrf.mxu3 }
  0xa2   :  { %v144_v26 = vadd.f32 %v143_v23, %v99_v22 }
  0xa4   :  { %v167_v27 = vadd.f32 %v166_v11, %v144_v26 }
  0xa6   :  { %v310_v28 = vmax.f32 %v167_v27, 0.0 }
  0xa7   :  { %v235_v29 = vpop.f32.mrf.mxu1  ;;  %v104_v30 = vpop.permute.xlu0 %103 }
  0xa8   :  { %318 = vst [vmem:[%s683_s3] sm:$0xff] %v310_v28  ;;  %v236_v31 = vadd.f32 %v235_v29, %v99_v22  ;;  %v189_v32 = vpop.f32.mrf.mxu2 }
  0xa9   :  { %v146_v33 = vpop.f32.mrf.mxu0  ;;  %v190_v51 = vadd.f32 %v189_v32, %v99_v22 }
  0xaa   :  { %v259_v34 = vadd.f32 %v258_v25, %v236_v31  ;;  %v147_v24 = vadd.f32 %v146_v33, %v104_v30  ;;  %v261_v35 = vpop.f32.mrf.mxu3 }
  0xac   :  { %v312_v36 = vmax.f32 %v259_v34, 0.0  ;;  %v170_v37 = vadd.f32 %v169_v21, %v147_v24 }
  0xae   :  { %320 = vst [vmem:[%s683_s3 + $0x10] sm:$0xff] %v312_v36  ;;  %v314_v38 = vmax.f32 %v170_v37, 0.0 }
  0xaf   :  { %v238_v39 = vpop.f32.mrf.mxu1 }
  0xb0   :  { %323 = vst [vmem:[%s683_s3 + $0x20] sm:$0xff] %v314_v38  ;;  %v239_v40 = vadd.f32 %v238_v39, %v104_v30  ;;  %v192_v41 = vpop.f32.mrf.mxu2 }
  0xb1   :  { %v193_v42 = vadd.f32 %v192_v41, %v104_v30  ;;  %v304_v45 = vpop.f32.mrf.mxu0 }
  0xb2   :  { %v262_v43 = vadd.f32 %v261_v35, %v239_v40  ;;  %v281_v44 = vpop.f32.mrf.mxu3 }
  0xb3   :  { %v216_v46 = vadd.f32 %v215_v20, %v193_v42  ;;  %v282_v47 = vadd.f32 %v281_v44, %v99_v22 }
  0xb4   :  { %v316_v48 = vmax.f32 %v262_v43, 0.0 }
  0xb5   :  { %v315_v49 = vmax.f32 %v216_v46, 0.0  ;;  %v305_v50 = vadd.f32 %v304_v45, %v282_v47 }
  0xb6   :  { %325 = vst [vmem:[%s683_s3 + $0x30] sm:$0xff] %v316_v48 }
  0xb7   :  { %324 = vst [vmem:[%s683_s3 + $0x28] sm:$0xff] %v315_v49  ;;  %v313_v52 = vmax.f32 %v305_v50, 0.0  ;;  %v307_v56 = vpop.f32.mrf.mxu1 }
  0xb8   :  { %v212_v53 = vpop.f32.mrf.mxu2 }
  0xb9   :  { %322 = vst.msk [vmem:[%s683_s3 + $0x18] sm:$0xff] %vm321_vm2, %v313_v52  ;;  %v213_v54 = vadd.f32 %v212_v53, %v190_v51 }
  0xba   :  { %v284_v55 = vpop.f32.mrf.mxu3 }
  0xbb   :  { %v311_v57 = vmax.f32 %v213_v54, 0.0  ;;  %v285_v58 = vadd.f32 %v284_v55, %v104_v30 }
  0xbd   :  { %319 = vst [vmem:[%s683_s3 + $0x8] sm:$0xff] %v311_v57  ;;  %v308_v59 = vadd.f32 %v307_v56, %v285_v58 }
  0xbf   :  { %v317_v60 = vmax.f32 %v308_v59, 0.0 }
  0xc1   :  { %326 = vst.msk [vmem:[%s683_s3 + $0x38] sm:$0xff] %vm321_vm2, %v317_v60 }

// kernel: comn_01_forward.5
= control target key start
LH: loop header
LB: loop body
LE: loop exit
PB: predicated region body
PF: predicated region fallthrough
CT: control target
= control target key end

     0   :  { %s1727_s0 = inlined_call_operand.vmem [shape: f32[784,64], index: 0, kind: input, shape index: {}]   ;;  %s1728_s1 = inlined_call_operand.vmem [shape: f32[4,784], index: 1, kind: input, shape index: {}]   ;;  %s1729_s2 = inlined_call_operand.vmem [shape: f32[4,1], index: 2, kind: input, shape index: {}]   ;;  %s1730_s3 = inlined_call_operand.vmem [shape: f32[1,5], index: 3, kind: input, shape index: {}]   ;;  %s1731_s4 = inlined_call_operand.vmem [shape: f32[5,10], index: 4, kind: input, shape index: {}]   ;;  %s1732_s5 = inlined_call_operand.vmem [shape: f32[1,10], index: 5, kind: input, shape index: {}]   ;;  %s1733_s6 = inlined_call_operand.vmem [shape: f32[10,10], index: 6, kind: input, shape index: {}]   ;;  %s1734_s7 = inlined_call_operand.vmem [shape: f32[1,10], index: 7, kind: input, shape index: {}]   ;;  %s1735_s8 = inlined_call_operand.vmem [shape: f32[10,9], index: 8, kind: input, shape index: {}]   ;;  %s1736_s9 = inlined_call_operand.vmem [shape: f32[1,9], index: 9, kind: input, shape index: {}]   ;;  %s1737_s10 = inlined_call_operand.vmem [shape: f32[37,18], index: 10, kind: input, shape index: {}]   ;;  %s1738_s11 = inlined_call_operand.vmem [shape: f32[9,18], index: 11, kind: input, shape index: {}]   ;;  %s1739_s12 = inlined_call_operand.vmem [shape: f32[1,18], index: 12, kind: input, shape index: {}]   ;;  %s1740_s13 = inlined_call_operand.vmem [shape: f32[18,18], index: 13, kind: input, shape index: {}]   ;;  %s1741_s14 = inlined_call_operand.vmem [shape: f32[1,18], index: 14, kind: input, shape index: {}]   ;;  %s1742_s15 = inlined_call_operand.vmem [shape: f32[18,4], index: 15, kind: input, shape index: {}]   ;;  %s1743_s16 = inlined_call_operand.vmem [shape: f32[1,4], index: 16, kind: input, shape index: {}]   ;;  %s1744_s17 = inlined_call_operand.vmem [shape: f32[36], index: 17, kind: input, shape index: {}]   ;;  %s1745_s18 = inlined_call_operand.<no memory space> [shape: f32[1], index: 18, kind: input, shape index: {}]   ;;  %s1746_s19 = inlined_call_operand.vmem [shape: f32[4], index: 19, kind: input, shape index: {}]   ;;  %s1747_s20 = inlined_call_operand.hbm [shape: f32[1,4], index: 20, kind: output, shape index: {}]  }
   0x1   :  { %1750 = sst [smem:[#allocation12_spill]] %s1727_s0 }
   0x2   :  { %1751 = sst [smem:[#allocation13_spill]] %s1728_s1 }
   0x3   :  { %1752 = sst [smem:[#allocation14_spill]] %s1729_s2 }
   0x4   :  { %1753 = sst [smem:[#allocation15_spill]] %s1730_s3 }
   0x5   :  { %1754 = sst [smem:[#allocation16_spill]] %s1731_s4 }
   0x6   :  { %26 = vsyncpa [#allocation5], 0 }
   0x7   :  { %27 = vsyncpa [#allocation7], 0 }
   0x8   :  { %28 = vsyncpa [#allocation4], 0  ;;  %s68_s23 = sshll.u32 %s1744_s17, 4  ;;  %s79_s25 = sshll.u32 %s1746_s19, 4  ;;  %s69_s23 = int_to_ptr.vmem [resolvable:$true] %s68_s23  ;;  %s80_s25 = int_to_ptr.vmem [resolvable:$true] %s79_s25 }
   0x9   :  { %s1134_s3 = smov [#allocation3]   ;;  %s1135_s26 = smov [#allocation6]  }
   0xa   :  { %71 = dma.vmem_to_smem %s69_s23, 16, %s1134_s3, [#allocation5]  }
   0xb   :  { %82 = dma.vmem_to_smem %s80_s25, 16, %s1135_s26, [#allocation7]  }
   0xc   :  { %1128 = dma.done.wait [#allocation5], 16  }
   0xd   :  { %1129 = vsyncadd [#allocation5], 4294967280 }
   0xe   :  { %1130 = dma.done.wait [#allocation7], 16  }
   0xf   :  { %1131 = vsyncadd [#allocation7], 4294967280 }
  0x10   :  { %91 = sfence }
  0x11   :  { %s1755_s4 = sld [smem:[#allocation12_spill]]  ;;  %vm224_vm0 = vcmask 130048   ;;  %vm716_vm1 = vcmask 1044480   ;;  %vm712_vm2 = vcmask 39936   ;;  %s1137_s2 = smov 119   ;;  %vm751_vm3 = vcmask 1041408  }
  0x12   :  { %s1756_s27 = sld [smem:[#allocation13_spill]]  ;;  %s1138_s25 = smov 126   ;;  %vm747_vm5 = vcmask 80896   ;;  %vm838_vm11 = vcmask 1040384  }
  0x13   :  { %s1758_s30 = sld [smem:[#allocation16_spill]]  ;;  %s1139_s26 = smov 127  }
  0x14   :  { %s1759_s0 = sld [smem:[#allocation15_spill]]  ;;  %s1141_s19 = smov 120  }
  0x15   :  { %s1001_s21 = sld [smem:[#allocation3 + $0x2]] }
  0x16   :  { %s1000_s1 = sld [smem:[#allocation3 + $0x1]] }
  0x17   :  { %v111_v0 = vld [vmem:[%s1755_s4 + $0x78] sm:$0xff]  ;;  %v110_v1 = vld [vmem:[%s1755_s4 + $0x70] sm:$0xff]  ;;  %v109_v4 = vld [vmem:[%s1755_s4 + $0x68] sm:$0xff]  ;;  %s1004_s22 = sld [smem:[#allocation3 + $0x5]] }
  0x18   :  { %v127_v2 = vld [vmem:[%s1755_s4 + $0xf8] sm:$0xff]  ;;  %227 = vmatpush.msra.mxu0 %v111_v0  ;;  %v126_v3 = vld [vmem:[%s1755_s4 + $0xf0] sm:$0xff]  ;;  %v125_v5 = vld [vmem:[%s1755_s4 + $0xe8] sm:$0xff]  ;;  %s1002_s23 = sld [smem:[#allocation3 + $0x3]] }
  0x19   :  { %247 = vmatpush.msra.mxu1 %v127_v2  ;;  %v108_v6 = vld [vmem:[%s1755_s4 + $0x60] sm:$0xff]  ;;  %v107_v8 = vld [vmem:[%s1755_s4 + $0x58] sm:$0xff]  ;;  %v106_v10 = vld [vmem:[%s1755_s4 + $0x50] sm:$0xff]  ;;  %s1005_s24 = sld [smem:[#allocation3 + $0x6]] }
  0x1a   :  { %228 = vmatpush.msra.mxu0 %v110_v1  ;;  %v124_v7 = vld [vmem:[%s1755_s4 + $0xe0] sm:$0xff]  ;;  %v123_v9 = vld [vmem:[%s1755_s4 + $0xd8] sm:$0xff]  ;;  %v122_v12 = vld [vmem:[%s1755_s4 + $0xd0] sm:$0xff]  ;;  %s1009_s3 = sld [smem:[#allocation3 + $0xa]] }
  0x1b   :  { %248 = vmatpush.msra.mxu1 %v126_v3  ;;  %v143_v11 = vld [vmem:[%s1755_s4 + $0x178] sm:$0xff]  ;;  %v142_v13 = vld [vmem:[%s1755_s4 + $0x170] sm:$0xff]  ;;  %v141_v15 = vld [vmem:[%s1755_s4 + $0x168] sm:$0xff]  ;;  %s1007_s28 = sld [smem:[#allocation3 + $0x8]] }
  0x1c   :  { %229 = vmatpush.msra.mxu0 %v109_v4  ;;  %267 = vmatpush.msra.mxu2 %v143_v11  ;;  %v159_v14 = vld [vmem:[%s1755_s4 + $0x1f8] sm:$0xff]  ;;  %v158_v16 = vld [vmem:[%s1755_s4 + $0x1f0] sm:$0xff]  ;;  %v105_v17 = vld [vmem:[%s1755_s4 + $0x48] sm:$0xff]  ;;  %s1006_s17 = sld [smem:[#allocation3 + $0x7]] }
  0x1d   :  { %249 = vmatpush.msra.mxu1 %v125_v5  ;;  %v121_v18 = vld [vmem:[%s1755_s4 + $0xc8] sm:$0xff]  ;;  %287 = vmatpush.msra.mxu3 %v159_v14  ;;  %v140_v19 = vld [vmem:[%s1755_s4 + $0x160] sm:$0xff]  ;;  %v139_v23 = vld [vmem:[%s1755_s4 + $0x158] sm:$0xff]  ;;  %s1011_s29 = sld [smem:[#allocation3 + $0xc]] }
  0x1e   :  { %230 = vmatpush.msra.mxu0 %v108_v6  ;;  %268 = vmatpush.msra.mxu2 %v142_v13  ;;  %v157_v20 = vld [vmem:[%s1755_s4 + $0x1e8] sm:$0xff]  ;;  %v104_v21 = vld [vmem:[%s1755_s4 + $0x40] sm:$0xff]  ;;  %v103_v25 = vld [vmem:[%s1755_s4 + $0x38] sm:$0xff] }
  0x1f   :  { %250 = vmatpush.msra.mxu1 %v124_v7  ;;  %v120_v22 = vld [vmem:[%s1755_s4 + $0xc0] sm:$0xff]  ;;  %288 = vmatpush.msra.mxu3 %v158_v16  ;;  %v119_v26 = vld [vmem:[%s1755_s4 + $0xb8] sm:$0xff]  ;;  %v138_v27 = vld [vmem:[%s1755_s4 + $0x150] sm:$0xff] }
  0x20   :  { %231 = vmatpush.msra.mxu0 %v107_v8  ;;  %269 = vmatpush.msra.mxu2 %v141_v15  ;;  %v156_v24 = vld [vmem:[%s1755_s4 + $0x1e0] sm:$0xff]  ;;  %v155_v28 = vld [vmem:[%s1755_s4 + $0x1d8] sm:$0xff]  ;;  %v102_v29 = vld [vmem:[%s1755_s4 + $0x30] sm:$0xff] }
  0x21   :  { %251 = vmatpush.msra.mxu1 %v123_v9  ;;  %289 = vmatpush.msra.mxu3 %v157_v20  ;;  %v118_v30 = vld [vmem:[%s1755_s4 + $0xb0] sm:$0xff]  ;;  %v137_v31 = vld [vmem:[%s1755_s4 + $0x148] sm:$0xff]  ;;  %v136_v35 = vld [vmem:[%s1755_s4 + $0x140] sm:$0xff] }
  0x22   :  { %232 = vmatpush.msra.mxu0 %v106_v10  ;;  %270 = vmatpush.msra.mxu2 %v140_v19  ;;  %v154_v32 = vld [vmem:[%s1755_s4 + $0x1d0] sm:$0xff]  ;;  %v101_v33 = vld [vmem:[%s1755_s4 + $0x28] sm:$0xff]  ;;  %v100_v37 = vld [vmem:[%s1755_s4 + $0x20] sm:$0xff] }
  0x23   :  { %252 = vmatpush.msra.mxu1 %v122_v12  ;;  %290 = vmatpush.msra.mxu3 %v156_v24  ;;  %v117_v34 = vld [vmem:[%s1755_s4 + $0xa8] sm:$0xff]  ;;  %v116_v38 = vld [vmem:[%s1755_s4 + $0xa0] sm:$0xff]  ;;  %v135_v39 = vld [vmem:[%s1755_s4 + $0x138] sm:$0xff] }
  0x24   :  { %233 = vmatpush.msra.mxu0 %v105_v17  ;;  %271 = vmatpush.msra.mxu2 %v139_v23  ;;  %v153_v36 = vld [vmem:[%s1755_s4 + $0x1c8] sm:$0xff]  ;;  %v152_v40 = vld [vmem:[%s1755_s4 + $0x1c0] sm:$0xff]  ;;  %v99_v41 = vld [vmem:[%s1755_s4 + $0x18] sm:$0xff] }
  0x25   :  { %253 = vmatpush.msra.mxu1 %v121_v18  ;;  %291 = vmatpush.msra.mxu3 %v155_v28  ;;  %v115_v42 = vld [vmem:[%s1755_s4 + $0x98] sm:$0xff]  ;;  %v134_v43 = vld [vmem:[%s1755_s4 + $0x130] sm:$0xff]  ;;  %v133_v47 = vld [vmem:[%s1755_s4 + $0x128] sm:$0xff] }
  0x26   :  { %234 = vmatpush.msra.mxu0 %v104_v21  ;;  %272 = vmatpush.msra.mxu2 %v138_v27  ;;  %v151_v44 = vld [vmem:[%s1755_s4 + $0x1b8] sm:$0xff]  ;;  %v98_v45 = vld [vmem:[%s1755_s4 + $0x10] sm:$0xff]  ;;  %v97_v49 = vld [vmem:[%s1755_s4 + $0x8] sm:$0xff] }
  0x27   :  { %254 = vmatpush.msra.mxu1 %v120_v22  ;;  %292 = vmatpush.msra.mxu3 %v154_v32  ;;  %v114_v46 = vld [vmem:[%s1755_s4 + $0x90] sm:$0xff]  ;;  %v113_v50 = vld [vmem:[%s1755_s4 + $0x88] sm:$0xff]  ;;  %v132_v51 = vld [vmem:[%s1755_s4 + $0x120] sm:$0xff]  ;;  %v1136_v32 = vmov 0  }
  0x28   :  { %235 = vmatpush.msra.mxu0 %v103_v25  ;;  %273 = vmatpush.msra.mxu2 %v137_v31  ;;  %v150_v48 = vld [vmem:[%s1755_s4 + $0x1b0] sm:$0xff]  ;;  %v149_v52 = vld [vmem:[%s1755_s4 + $0x1a8] sm:$0xff]  ;;  %v96_v53 = vld [vmem:[%s1755_s4] sm:$0xff] }
  0x29   :  { %255 = vmatpush.msra.mxu1 %v119_v26  ;;  %293 = vmatpush.msra.mxu3 %v153_v36  ;;  %v112_v54 = vld [vmem:[%s1755_s4 + $0x80] sm:$0xff]  ;;  %v93_v55 = vld [vmem:[%s1756_s27 + $0x8] sm:$0xff]  ;;  %v175_v56 = vld [vmem:[%s1755_s4 + $0x278] sm:$0xff] }
  0x2a   :  { %236 = vmatpush.msra.mxu0 %v102_v29  ;;  %274 = vmatpush.msra.mxu2 %v136_v35  ;;  %v191_v57 = vld [vmem:[%s1755_s4 + $0x2f8] sm:$0xff]  ;;  %206 = vst [vmem:[#allocation1 + $0x10] ss:$2 sm:$0xff] %v93_v55  ;;  %v92_v58 = vld [vmem:[%s1756_s27] sm:$0xff]  ;;  %v174_v61 = vld [vmem:[%s1755_s4 + $0x270] sm:$0xff] }
  0x2b   :  { %256 = vmatpush.msra.mxu1 %v118_v30  ;;  %294 = vmatpush.msra.mxu3 %v152_v40  ;;  %v131_v59 = vld [vmem:[%s1755_s4 + $0x118] sm:$0xff]  ;;  %v148_v60 = vld [vmem:[%s1755_s4 + $0x1a0] sm:$0xff]  ;;  %204 = vst [vmem:[#allocation1] ss:$2 sm:$0xff] %v92_v58  ;;  %v190_v62 = vld [vmem:[%s1755_s4 + $0x2f0] sm:$0xff] }
  0x2c   :  { %237 = vmatpush.msra.mxu0 %v101_v33  ;;  %275 = vmatpush.msra.mxu2 %v135_v39  ;;  %v130_v63 = vld [vmem:[%s1755_s4 + $0x110] sm:$0xff]  ;;  %v147_v0 = vld [vmem:[%s1755_s4 + $0x198] sm:$0xff]  ;;  %v173_v2 = vld [vmem:[%s1755_s4 + $0x268] sm:$0xff] }
  0x2d   :  { %257 = vmatpush.msra.mxu1 %v117_v34  ;;  %295 = vmatpush.msra.mxu3 %v151_v44  ;;  %v95_v1 = vld [vmem:[%s1756_s27 + $0x18] sm:$0xf]  ;;  %v189_v3 = vld [vmem:[%s1755_s4 + $0x2e8] sm:$0xff]  ;;  %v94_v4 = vld [vmem:[%s1756_s27 + $0x10] sm:$0xff]  ;;  %s1757_s27 = sld [smem:[#allocation14_spill]] }
  0x2e   :  { %238 = vmatpush.msra.mxu0 %v100_v37  ;;  %276 = vmatpush.msra.mxu2 %v134_v43  ;;  %210 = vst [vmem:[#allocation1 + $0x30] ss:$2 sm:$0xff] %v95_v1  ;;  %v129_v5 = vld [vmem:[%s1755_s4 + $0x108] sm:$0xff]  ;;  %v146_v6 = vld [vmem:[%s1755_s4 + $0x190] sm:$0xff]  ;;  %v172_v7 = vld [vmem:[%s1755_s4 + $0x260] sm:$0xff]  ;;  %v384_v1 = vstv %s1001_s21  ;;  %s1014_s21 = sld [smem:[#allocation3 + $0xf]] }
  0x2f   :  { %258 = vmatpush.msra.mxu1 %v116_v38  ;;  %296 = vmatpush.msra.mxu3 %v150_v48  ;;  %208 = vst [vmem:[#allocation1 + $0x20] ss:$2 sm:$0xff] %v94_v4  ;;  %v188_v8 = vld [vmem:[%s1755_s4 + $0x2e0] sm:$0xff]  ;;  %v145_v10 = vld [vmem:[%s1755_s4 + $0x188] sm:$0xff]  ;;  %v171_v11 = vld [vmem:[%s1755_s4 + $0x258] sm:$0xff] }
  0x30   :  { %239 = vmatpush.msra.mxu0 %v99_v41  ;;  %277 = vmatpush.msra.mxu2 %v133_v47  ;;  %v128_v9 = vld [vmem:[%s1755_s4 + $0x100] sm:$0xff]  ;;  %v187_v12 = vld [vmem:[%s1755_s4 + $0x2d8] sm:$0xff]  ;;  %v170_v15 = vld [vmem:[%s1755_s4 + $0x250] sm:$0xff] }
  0x31   :  { %259 = vmatpush.msra.mxu1 %v115_v42  ;;  %297 = vmatpush.msra.mxu3 %v149_v52  ;;  %v213_v13 = vld.sshfl [vmem:[#allocation1 + $0x10] sm:$0xff pattern:$0x75316420]  ;;  %v144_v14 = vld [vmem:[%s1755_s4 + $0x180] sm:$0xff]  ;;  %v193_v17 = vld [vmem:[%s1755_s4 + $0x308] sm:$0xff] }
  0x32   :  { %240 = vmatpush.msra.mxu0 %v98_v45  ;;  %278 = vmatpush.msra.mxu2 %v132_v51  ;;  %v186_v16 = vld [vmem:[%s1755_s4 + $0x2d0] sm:$0xff]  ;;  %v211_v18 = vld.sshfl [vmem:[#allocation1] sm:$0xff pattern:$0x75316420]  ;;  %v169_v19 = vld [vmem:[%s1755_s4 + $0x248] sm:$0xff] }
  0x33   :  { %260 = vmatpush.msra.mxu1 %v114_v46  ;;  %298 = vmatpush.msra.mxu3 %v148_v60  ;;  %v185_v20 = vld [vmem:[%s1755_s4 + $0x2c8] sm:$0xff]  ;;  %v214_v21 = vld.sshfl [vmem:[#allocation1 + $0x18] sm:$0xff pattern:$0x75316420]  ;;  %v168_v23 = vld [vmem:[%s1755_s4 + $0x240] sm:$0xff] }
  0x34   :  { %241 = vmatpush.msra.mxu0 %v97_v49  ;;  %279 = vmatpush.msra.mxu2 %v131_v59  ;;  %v212_v22 = vld.sshfl [vmem:[#allocation1 + $0x8] sm:$0xff pattern:$0x75316420]  ;;  %v184_v24 = vld [vmem:[%s1755_s4 + $0x2c0] sm:$0xff]  ;;  %v167_v26 = vld [vmem:[%s1755_s4 + $0x238] sm:$0xff] }
  0x35   :  { %261 = vmatpush.msra.mxu1 %v113_v50  ;;  %299 = vmatpush.msra.mxu3 %v147_v0  ;;  %v192_v25 = vld [vmem:[%s1755_s4 + $0x300] sm:$0xff]  ;;  %v183_v27 = vld [vmem:[%s1755_s4 + $0x2b8] sm:$0xff]  ;;  %v217_v28 = vld.sshfl [vmem:[#allocation1 + $0x30] sm:$0xff pattern:$0x75316420] }
  0x36   :  { %242 = vmatpush.msra.mxu0 %v96_v53  ;;  %280 = vmatpush.msra.mxu2 %v130_v63  ;;  %v194_v29 = vld [vmem:[%s1757_s27] sm:$0xf]  ;;  %v166_v30 = vld [vmem:[%s1755_s4 + $0x230] sm:$0xff]  ;;  %v165_v33 = vld [vmem:[%s1755_s4 + $0x228] sm:$0xff]  ;;  %s1140_s27 = smov 118  }
  0x37   :  { %262 = vmatpush.msra.mxu1 %v112_v54  ;;  %300 = vmatpush.msra.mxu3 %v146_v6  ;;  %v182_v31 = vld [vmem:[%s1755_s4 + $0x2b0] sm:$0xff]  ;;  %v181_v34 = vld [vmem:[%s1755_s4 + $0x2a8] sm:$0xff]  ;;  %v164_v35 = vld [vmem:[%s1755_s4 + $0x220] sm:$0xff] }
  0x38   :  { %307 = vmatpush.msrb.mxu0 %v175_v56  ;;  %281 = vmatpush.msra.mxu2 %v129_v5  ;;  %v180_v36 = vld [vmem:[%s1755_s4 + $0x2a0] sm:$0xff]  ;;  %v163_v37 = vld [vmem:[%s1755_s4 + $0x218] sm:$0xff]  ;;  %v162_v39 = vld [vmem:[%s1755_s4 + $0x210] sm:$0xff] }
  0x39   :  { %327 = vmatpush.msrb.mxu1 %v191_v57  ;;  %301 = vmatpush.msra.mxu3 %v145_v10  ;;  %v179_v38 = vld [vmem:[%s1755_s4 + $0x298] sm:$0xff]  ;;  %v178_v40 = vld [vmem:[%s1755_s4 + $0x290] sm:$0xff]  ;;  %v161_v41 = vld [vmem:[%s1755_s4 + $0x208] sm:$0xff] }
  0x3a   :  { %308 = vmatpush.msrb.mxu0 %v174_v61  ;;  %282 = vmatpush.msra.mxu2 %v128_v9  ;;  %v177_v42 = vld [vmem:[%s1755_s4 + $0x288] sm:$0xff]  ;;  %v160_v43 = vld [vmem:[%s1755_s4 + $0x200] sm:$0xff]  ;;  %v416_v9 = vstv %s1005_s24  ;;  %s1015_s24 = sld [smem:[#allocation3 + $0x10]] }
  0x3b   :  { %328 = vmatpush.msrb.mxu1 %v190_v62  ;;  %283 = vmatmul.f32.vlgmr.msra.gmra.mxu2 %v213_v13  ;;  %v176_v44 = vld [vmem:[%s1755_s4 + $0x280] sm:$0xff]  ;;  %v216_v46 = vld.sshfl [vmem:[#allocation1 + $0x28] sm:$0xff pattern:$0x75316420]  ;;  %s1003_s4 = sld [smem:[#allocation3 + $0x4]]  ;;  %v447_v13 = vstv %s1009_s3 }
  0x3c   :  { %309 = vmatpush.msrb.mxu0 %v173_v2  ;;  %302 = vmatpush.msra.mxu3 %v144_v14  ;;  %v215_v45 = vld.sshfl [vmem:[#allocation1 + $0x20] sm:$0xff pattern:$0x75316420]  ;;  %v376_v2 = vstv %s1000_s1  ;;  %v432_v14 = vstv %s1007_s28  ;;  %s1013_s1 = sld [smem:[#allocation3 + $0xe]] }
  0x3d   :  { %329 = vmatpush.msrb.mxu1 %v189_v3  ;;  %361 = vmatpush.msrb.mxu2 %v193_v17  ;;  %v710_v47 = vld [vmem:[%s1758_s30] sm:$0x1f]  ;;  %s1010_s30 = sld [smem:[#allocation3 + $0xb]] }
  0x3e   :  { %310 = vmatpush.msrb.mxu0 %v172_v7  ;;  %303 = vmatmul.f32.vlgmr.msra.gmra.mxu3 %v214_v21  ;;  %v709_v48 = vld [vmem:[%s1759_s0] sm:$0x1]  ;;  %v408_v7 = vstv %s1004_s22  ;;  %s1012_s0 = sld [smem:[#allocation3 + $0xd]]  ;;  %s1143_s22 = smov 110  }
  0x3f   :  { %330 = vmatpush.msrb.mxu1 %v188_v8  ;;  %243 = vmatmul.f32.vlgmr.msra.gmra.mxu0 %v211_v18  ;;  %v392_v8 = vstv %s1002_s23  ;;  %s1144_s23 = smov 111   ;;  %s1018_s3 = sld [smem:[#allocation3 + $0x13]] }
  0x40   :  { %311 = vmatpush.msrb.mxu0 %v171_v11  ;;  %263 = vmatmul.f32.vlgmr.msra.gmra.mxu1 %v212_v22  ;;  %s1016_s28 = sld [smem:[#allocation3 + $0x11]] }
  0x41   :  { %331 = vmatpush.msrb.mxu1 %v187_v12  ;;  %362 = vmatpush.msrb.mxu2 %v192_v25  ;;  %v400_v0 = vstv %s1003_s4  ;;  %s1142_s4 = smov 112  }
  0x42   :  { %312 = vmatpush.msrb.mxu0 %v170_v15  ;;  %1067 = vset.pattern.permute.xlu0 %v1136_v32  ;;  %v424_v15 = vstv %s1006_s17  ;;  %s1019_s17 = sld [smem:[#allocation3 + $0x14]] }
  0x43   :  { %332 = vmatpush.msrb.mxu1 %v186_v16  ;;  %999 = vmatmul.msk.f32.vlgmr.msrb.gmra.mxu2 %vm224_vm0, %v217_v28  ;;  %v456_v21 = vstv %s1010_s30  ;;  %s1020_s30 = sld [smem:[#allocation3 + $0x15]]  ;;  %vm834_vm0 = vcmask 72704  }
  0x44   :  { %313 = vmatpush.msrb.mxu0 %v169_v19  ;;  %197 = vperm.xlu0 %1067, %v194_v29   ;;  %v474_v22 = vstv %s1012_s0  ;;  %v492_v29 = vstv %s1014_s21  ;;  %s1022_s0 = sld [smem:[#allocation3 + $0x17]] }
  0x45   :  { %333 = vmatpush.msrb.mxu1 %v185_v20  ;;  %1039 = vmatpush.msk.msrb.mxu3 %vm716_vm1, %v710_v47  ;;  %v465_v20 = vstv %s1011_s29  ;;  %s1021_s29 = sld [smem:[#allocation3 + $0x16]] }
  0x46   :  { %314 = vmatpush.msrb.mxu0 %v168_v23  ;;  %1040 = vmatmul.msk.f32.vlgmr.msrb.gmra.mxu3 %vm712_vm2, %v709_v48  ;;  %s1024_s21 = sld [smem:[#allocation3 + $0x19]] }
  0x47   :  { %334 = vmatpush.msrb.mxu1 %v184_v24 }
  0x48   :  { %315 = vmatpush.msrb.mxu0 %v167_v26 }
  0x49   :  { %335 = vmatpush.msrb.mxu1 %v183_v27  ;;  %v544_v48 = vstv %s1020_s30  ;;  %s1030_s30 = sld [smem:[#allocation3 + $0x1f]] }
  0x4a   :  { %316 = vmatpush.msrb.mxu0 %v166_v30  ;;  %v483_v30 = vstv %s1013_s1  ;;  %s1023_s1 = sld [smem:[#allocation3 + $0x18]] }
  0x4b   :  { %336 = vmatpush.msrb.mxu1 %v182_v31  ;;  %v501_v31 = vstv %s1015_s24  ;;  %v553_v47 = vstv %s1021_s29  ;;  %s1025_s24 = sld [smem:[#allocation3 + $0x1a]] }
  0x4c   :  { %317 = vmatpush.msrb.mxu0 %v165_v33  ;;  %s1031_s29 = sld [smem:[#allocation3 + $0x20]] }
  0x4d   :  { %337 = vmatpush.msrb.mxu1 %v181_v34 }
  0x4e   :  { %318 = vmatpush.msrb.mxu0 %v164_v35 }
  0x4f   :  { %338 = vmatpush.msrb.mxu1 %v180_v36 }
  0x50   :  { %319 = vmatpush.msrb.mxu0 %v163_v37 }
  0x51   :  { %339 = vmatpush.msrb.mxu1 %v179_v38  ;;  %v526_v38 = vstv %s1018_s3  ;;  %s1028_s3 = sld [smem:[#allocation3 + $0x1d]] }
  0x52   :  { %320 = vmatpush.msrb.mxu0 %v162_v39  ;;  %v510_v39 = vstv %s1016_s28  ;;  %s1027_s28 = sld [smem:[#allocation3 + $0x1c]] }
  0x53   :  { %340 = vmatpush.msrb.mxu1 %v178_v40  ;;  %v535_v40 = vstv %s1019_s17  ;;  %s1029_s17 = sld [smem:[#allocation3 + $0x1e]] }
  0x54   :  { %321 = vmatpush.msrb.mxu0 %v161_v41 }
  0x55   :  { %341 = vmatpush.msrb.mxu1 %v177_v42 }
  0x56   :  { %322 = vmatpush.msrb.mxu0 %v160_v43 }
  0x57   :  { %342 = vmatpush.msrb.mxu1 %v176_v44  ;;  %323 = vmatmul.f32.vlgmr.msrb.gmra.mxu0 %v215_v45 }
  0x58   :  { %343 = vmatmul.f32.vlgmr.msrb.gmra.mxu1 %v216_v46 }
  0xb6   :  { %v198_v49 = vpop.permute.xlu0 %197 }
  0xbc   :  { %v244_v50 = vpop.f32.mrf.mxu0 }
  0xbd   :  { %v245_v51 = vadd.f32 %v244_v50, %v198_v49  ;;  %v264_v52 = vpop.f32.mrf.mxu1  ;;  %v562_v49 = vstv %s1022_s0  ;;  %s1032_s0 = sld [smem:[#allocation3 + $0x21]] }
  0xbe   :  { %v284_v54 = vpop.f32.mrf.mxu2 }
  0xbf   :  { %v265_v53 = vadd.f32 %v264_v52, %v245_v51 }
  0xc1   :  { %v285_v55 = vadd.f32 %v284_v54, %v265_v53  ;;  %v304_v56 = vpop.f32.mrf.mxu3 }
  0xc3   :  { %v305_v57 = vadd.f32 %v304_v56, %v285_v55  ;;  %v580_v56 = vstv %s1024_s21  ;;  %s1034_s21 = sld [smem:[#allocation3 + $0x23]] }
  0xc6   :  { %v364_v61 = vpop.f32.mrf.mxu2 }
  0xd4   :  { %v324_v58 = vpop.f32.mrf.mxu0 }
  0xd5   :  { %v344_v59 = vpop.f32.mrf.mxu1  ;;  %v325_v60 = vadd.f32 %v324_v58, %v305_v57  ;;  %v571_v57 = vstv %s1023_s1  ;;  %v589_v58 = vstv %s1025_s24  ;;  %s1033_s1 = sld [smem:[#allocation3 + $0x22]] }
  0xd6   :  { %s705_s24 = sld [smem:[#allocation6]] }
  0xd7   :  { %v345_v62 = vadd.f32 %v344_v59, %v325_v60 }
  0xd9   :  { %v365_v63 = vadd.f32 %v364_v61, %v345_v62 }
  0xdb   :  { %v1573_v3 = vmax.f32 %v365_v63, 0.0 }
  0xdd   :  { %v401_v4 = vmul.f32 %v400_v0, %v1573_v3  ;;  %v385_v5 = vmul.f32 %v384_v1, %v1573_v3  ;;  %v377_v6 = vmul.f32 %v376_v2, %v1573_v3  ;;  %v409_v10 = vmul.f32 %v408_v7, %v1573_v3 }
  0xde   :  { %v393_v11 = vmul.f32 %v392_v8, %v1573_v3  ;;  %v417_v12 = vmul.f32 %v416_v9, %v1573_v3  ;;  %v448_v16 = vmul.f32 %v447_v13, %v1573_v3  ;;  %v433_v17 = vmul.f32 %v432_v14, %v1573_v3 }
  0xdf   :  { %403 = vrot.lane.b32.xlu2 %v401_v4, %s1137_s2  ;;  %387 = vrot.lane.b32.xlu1 %v385_v5, %s1138_s25  ;;  %v425_v18 = vmul.f32 %v424_v15, %v1573_v3  ;;  %v466_v23 = vmul.f32 %v465_v20, %v1573_v3  ;;  %v457_v24 = vmul.f32 %v456_v21, %v1573_v3  ;;  %v614_v1 = vstv %s1028_s3 }
  0xe0   :  { %379 = vrot.lane.b32.xlu0 %v377_v6, %s1139_s26  ;;  %v450_v19 = vrot.slane %v448_v16, 1  ;;  %v475_v25 = vmul.f32 %v474_v22, %v1573_v3  ;;  %v493_v32 = vmul.f32 %v492_v29, %v1573_v3  ;;  %v484_v33 = vmul.f32 %v483_v30, %v1573_v3  ;;  %v711_v30 = vld [vmem:[%s1732_s5] sm:$0x1]  ;;  %s1008_s5 = sld [smem:[#allocation3 + $0x9]] }
  0xe1   :  { %v468_v26 = vrot.slane %v466_v23, 1  ;;  %v459_v27 = vrot.slane %v457_v24, 1  ;;  %v502_v34 = vmul.f32 %v501_v31, %v1573_v3  ;;  %v527_v41 = vmul.f32 %v526_v38, %v1573_v3  ;;  %v737_v31 = vpop.f32.mrf.mxu3 }
  0xe2   :  { %v477_v28 = vrot.slane %v475_v25, 1  ;;  %v495_v35 = vrot.slane %v493_v32, 1  ;;  %v486_v36 = vrot.slane %v484_v33, 1  ;;  %v511_v42 = vmul.f32 %v510_v39, %v1573_v3  ;;  %v745_v33 = vld [vmem:[%s1733_s6 + $0x8] sm:$0x3] }
  0xe3   :  { %v504_v37 = vrot.slane %v502_v34, 1  ;;  %v536_v43 = vmul.f32 %v535_v40, %v1573_v3  ;;  %v529_v44 = vrot.slane %v527_v41, 2  ;;  %v554_v50 = vmul.f32 %v553_v47, %v1573_v3  ;;  %v744_v34 = vld [vmem:[%s1733_s6] sm:$0xff]  ;;  %1041 = vmatpush.msk.msra.mxu2 %vm751_vm3, %v745_v33  ;;  %s1017_s6 = sld [smem:[#allocation3 + $0x12]] }
  0xe4   :  { %v513_v45 = vrot.slane %v511_v42, 1  ;;  %v545_v51 = vmul.f32 %v544_v48, %v1573_v3  ;;  %v563_v52 = vmul.f32 %v562_v49, %v1573_v3  ;;  %v581_v59 = vmul.f32 %v580_v56, %v1573_v3 }
  0xe5   :  { %v538_v46 = vrot.slane %v536_v43, 2  ;;  %v556_v53 = vrot.slane %v554_v50, 2  ;;  %v572_v60 = vmul.f32 %v571_v57, %v1573_v3  ;;  %v590_v61 = vmul.f32 %v589_v58, %v1573_v3  ;;  %770 = vmatpush.msra.mxu2 %v744_v34 }
  0xe6   :  { %v547_v54 = vrot.slane %v545_v51, 2  ;;  %v565_v55 = vrot.slane %v563_v52, 2  ;;  %v583_v62 = vrot.slane %v581_v59, 2  ;;  %v605_v2 = vstv %s1027_s28 }
  0xe7   :  { %411 = vrot.lane.b32.xlu2 %v409_v10, %s1140_s27  ;;  %395 = vrot.lane.b32.xlu1 %v393_v11, %s1141_s19  ;;  %v574_v63 = vrot.slane %v572_v60, 2  ;;  %v592_v0 = vrot.slane %v590_v61, 2  ;;  %v623_v4 = vstv %s1029_s17  ;;  %v615_v5 = vmul.f32 %v614_v1, %v1573_v3 }
  0xe8   :  { %419 = vrot.lane.b32.xlu0 %v417_v12, %s1142_s4  ;;  %v606_v6 = vmul.f32 %v605_v2, %v1573_v3  ;;  %v624_v7 = vmul.f32 %v623_v4, %v1573_v3  ;;  %v641_v11 = vstv %s1031_s29  ;;  %v632_v12 = vstv %s1030_s30 }
  0xe9   :  { %v617_v8 = vrot.slane %v615_v5, 3  ;;  %v650_v13 = vstv %s1032_s0  ;;  %v642_v14 = vmul.f32 %v641_v11, %v1573_v3  ;;  %v633_v15 = vmul.f32 %v632_v12, %v1573_v3 }
  0xea   :  { %v608_v9 = vrot.slane %v606_v6, 3  ;;  %v626_v10 = vrot.slane %v624_v7, 3  ;;  %v651_v16 = vmul.f32 %v650_v13, %v1573_v3  ;;  %v668_v20 = vstv %s1034_s21 }
  0xeb   :  { %v659_v21 = vstv %s1033_s1  ;;  %v669_v22 = vmul.f32 %v668_v20, %v1573_v3  ;;  %v741_v32 = vstv %s705_s24  ;;  %v440_v50 = vstv %s1008_s5  ;;  %s1036_s1 = sld [smem:[#allocation6 + $0x1]] }
  0xec   :  { %v660_v23 = vmul.f32 %v659_v21, %v1573_v3  ;;  %s1037_s24 = sld [smem:[#allocation6 + $0x2]] }
  0xed   :  { %v671_v24 = vrot.slane %v669_v22, 3 }
  0xee   :  { %v662_v25 = vrot.slane %v660_v23, 3 }
  0xef   :  { %435 = vrot.lane.b32.xlu2 %v433_v17, %s1143_s22  ;;  %427 = vrot.lane.b32.xlu1 %v425_v18, %s1144_s23  ;;  %v644_v17 = vrot.slane %v642_v14, 3  ;;  %v635_v18 = vrot.slane %v633_v15, 3 }
  0xf0   :  { %451 = vrot.lane.b32.xlu0 %v450_v19, %s1139_s26  ;;  %v653_v19 = vrot.slane %v651_v16, 3 }
  0xf7   :  { %469 = vrot.lane.b32.xlu2 %v468_v26, %s1141_s19  ;;  %460 = vrot.lane.b32.xlu1 %v459_v27, %s1138_s25 }
  0xf8   :  { %478 = vrot.lane.b32.xlu0 %v477_v28, %s1137_s2 }
  0xff   :  { %496 = vrot.lane.b32.xlu2 %v495_v35, %s1142_s4  ;;  %487 = vrot.lane.b32.xlu1 %v486_v36, %s1140_s27  ;;  %v369_v35 = vstv %s1745_s18  ;;  %v738_v36 = vadd.f32 %v737_v31, %v711_v30  ;;  %s1026_s18 = sld [smem:[#allocation3 + $0x1b]] }
 0x100   :  { %505 = vrot.lane.b32.xlu0 %v504_v37, %s1144_s23 }
 0x101   :  { %vm740_vm4 = vcmp.gt.f32.partialorder %v738_v36, 0.0  ;;  %v742_v38 = vmul.f32 %v741_v32, %v738_v36 }
 0x103   :  { %v743_v42 = vsel %vm740_vm4, %v738_v36, %v742_v38  ;;  %vm899_vm4 = vcmask 146432  }
 0x104   :  { %1042 = vmatmul.msk.f32.vlgmr.msra.gmra.mxu2 %vm747_vm5, %v743_v42 }
 0x107   :  { %530 = vrot.lane.b32.xlu2 %v529_v44, %s1139_s26  ;;  %514 = vrot.lane.b32.xlu1 %v513_v45, %s1143_s22 }
 0x108   :  { %539 = vrot.lane.b32.xlu0 %v538_v46, %s1138_s25 }
 0x10f   :  { %557 = vrot.lane.b32.xlu2 %v556_v53, %s1137_s2  ;;  %548 = vrot.lane.b32.xlu1 %v547_v54, %s1141_s19  ;;  %v441_v53 = vmul.f32 %v440_v50, %v1573_v3 }
 0x110   :  { %566 = vrot.lane.b32.xlu0 %v565_v55, %s1140_s27 }
 0x111   :  { %v443_v58 = vrot.slane %v441_v53, 1 }
 0x117   :  { %584 = vrot.lane.b32.xlu2 %v583_v62, %s1144_s23  ;;  %575 = vrot.lane.b32.xlu1 %v574_v63, %s1142_s4 }
 0x118   :  { %593 = vrot.lane.b32.xlu0 %v592_v0, %s1143_s22 }
 0x11f   :  { %618 = vrot.lane.b32.xlu2 %v617_v8, %s1138_s25  ;;  %609 = vrot.lane.b32.xlu1 %v608_v9, %s1139_s26  ;;  %s371_s25 = sld [smem:[#allocation3]]  ;;  %v519_v8 = vstv %s1017_s6 }
 0x120   :  { %627 = vrot.lane.b32.xlu0 %v626_v10, %s1141_s19  ;;  %v520_v10 = vmul.f32 %v519_v8, %v1573_v3 }
 0x122   :  { %v522_v13 = vrot.slane %v520_v10, 2  ;;  %v833_v10 = vld [vmem:[%s1738_s11 + $0x8] sm:$0x1] }
 0x123   :  { %1046 = vmatpush.msk.msrb.mxu2 %vm838_vm11, %v833_v10 }
 0x125   :  { %v372_v28 = vstv %s371_s25 }
 0x126   :  { %v373_v29 = vmul.f32 %v372_v28, %v1573_v3 }
 0x127   :  { %645 = vrot.lane.b32.xlu2 %v644_v17, %s1140_s27  ;;  %636 = vrot.lane.b32.xlu1 %v635_v18, %s1137_s2 }
 0x128   :  { %654 = vrot.lane.b32.xlu0 %v653_v19, %s1142_s4  ;;  %v374_v40 = vadd.f32 %v373_v29, %v369_v35  ;;  %s1038_s4 = sld [smem:[#allocation6 + $0x3]] }
 0x12f   :  { %672 = vrot.lane.b32.xlu2 %v671_v24, %s1143_s22  ;;  %663 = vrot.lane.b32.xlu1 %v662_v25, %s1144_s23  ;;  %v598_v25 = vstv %s1026_s18 }
 0x130   :  { %v599_v29 = vmul.f32 %v598_v25, %v1573_v3 }
 0x132   :  { %v601_v33 = vrot.slane %v599_v29, 3 }
 0x139   :  { %v404_v26 = vpop.permute.xlu2 %403 }
 0x141   :  { %v412_v27 = vpop.permute.xlu2 %411 }
 0x149   :  { %v436_v41 = vpop.permute.xlu2 %435 }
 0x151   :  { %v388_v37 = vpop.permute.xlu1 %387  ;;  %v470_v49 = vpop.permute.xlu2 %469 }
 0x152   :  { %v380_v39 = vpop.permute.xlu0 %379 }
 0x153   :  { %v382_v43 = vadd.f32 %v380_v39, %v374_v40 }
 0x155   :  { %v390_v44 = vadd.f32 %v388_v37, %v382_v43 }
 0x159   :  { %v396_v45 = vpop.permute.xlu1 %395  ;;  %v497_v60 = vpop.permute.xlu2 %496 }
 0x15a   :  { %v398_v46 = vadd.f32 %v396_v45, %v390_v44  ;;  %v420_v47 = vpop.permute.xlu0 %419 }
 0x15c   :  { %v406_v48 = vadd.f32 %v404_v26, %v398_v46 }
 0x15e   :  { %v414_v51 = vadd.f32 %v412_v27, %v406_v48 }
 0x160   :  { %v422_v52 = vadd.f32 %v420_v47, %v414_v51 }
 0x161   :  { %v428_v54 = vpop.permute.xlu1 %427  ;;  %v531_v4 = vpop.permute.xlu2 %530 }
 0x162   :  { %v430_v55 = vadd.f32 %v428_v54, %v422_v52  ;;  %v452_v56 = vpop.permute.xlu0 %451 }
 0x164   :  { %v438_v57 = vadd.f32 %v436_v41, %v430_v55 }
 0x166   :  { %v445_v59 = vadd.f32 %v443_v58, %v438_v57 }
 0x168   :  { %v454_v61 = vadd.f32 %v452_v56, %v445_v59  ;;  %v780_v59 = vld [vmem:[%s1735_s8 + $0x8] sm:$0x3] }
 0x169   :  { %v461_v62 = vpop.permute.xlu1 %460  ;;  %v558_v16 = vpop.permute.xlu2 %557  ;;  %1043 = vmatpush.msk.msra.mxu3 %vm751_vm3, %v780_v59 }
 0x16a   :  { %v463_v63 = vadd.f32 %v461_v62, %v454_v61  ;;  %v479_v0 = vpop.permute.xlu0 %478 }
 0x16c   :  { %v472_v1 = vadd.f32 %v470_v49, %v463_v63 }
 0x16e   :  { %v481_v2 = vadd.f32 %v479_v0, %v472_v1  ;;  %v746_v1 = vld [vmem:[%s1734_s7] sm:$0x1] }
 0x171   :  { %v488_v5 = vpop.permute.xlu1 %487  ;;  %v585_v24 = vpop.permute.xlu2 %584 }
 0x172   :  { %v490_v6 = vadd.f32 %v488_v5, %v481_v2  ;;  %v506_v7 = vpop.permute.xlu0 %505 }
 0x174   :  { %v499_v9 = vadd.f32 %v497_v60, %v490_v6  ;;  %v779_v60 = vld [vmem:[%s1735_s8] sm:$0xff] }
 0x175   :  { %803 = vmatpush.msra.mxu3 %v779_v60 }
 0x176   :  { %v508_v11 = vadd.f32 %v506_v7, %v499_v9 }
 0x179   :  { %v515_v12 = vpop.permute.xlu1 %514  ;;  %v619_v34 = vpop.permute.xlu2 %618 }
 0x17a   :  { %v517_v14 = vadd.f32 %v515_v12, %v508_v11  ;;  %v540_v15 = vpop.permute.xlu0 %539  ;;  %v832_v11 = vld [vmem:[%s1738_s11] sm:$0xff] }
 0x17b   :  { %857 = vmatpush.msrb.mxu2 %v832_v11  ;;  %v781_v12 = vld [vmem:[%s1736_s9] sm:$0x1] }
 0x17c   :  { %v524_v17 = vadd.f32 %v522_v13, %v517_v14  ;;  %v831_v13 = vld [vmem:[%s1737_s10 + $0x20] sm:$0x1f]  ;;  %v830_v14 = vld [vmem:[%s1737_s10 + $0x18] sm:$0xff] }
 0x17d   :  { %1048 = vmatpush.msk.msrb.mxu3 %vm716_vm1, %v831_v13  ;;  %vm862_vm1 = vcmask 302080  }
 0x17e   :  { %v533_v18 = vadd.f32 %v531_v4, %v524_v17  ;;  %v776_v4 = vstv %s1036_s1  ;;  %v829_v17 = vld [vmem:[%s1737_s10 + $0x10] sm:$0xff] }
 0x17f   :  { %881 = vmatpush.msrb.mxu3 %v830_v14 }
 0x180   :  { %v542_v19 = vadd.f32 %v540_v15, %v533_v18 }
 0x181   :  { %v549_v20 = vpop.permute.xlu1 %548  ;;  %v646_v41 = vpop.permute.xlu2 %645  ;;  %882 = vmatpush.msrb.mxu3 %v829_v17 }
 0x182   :  { %v551_v21 = vadd.f32 %v549_v20, %v542_v19  ;;  %v567_v22 = vpop.permute.xlu0 %566  ;;  %v828_v19 = vld [vmem:[%s1737_s10 + $0x8] sm:$0xff] }
 0x183   :  { %883 = vmatpush.msrb.mxu3 %v828_v19 }
 0x184   :  { %v560_v23 = vadd.f32 %v558_v16, %v551_v21 }
 0x186   :  { %v569_v26 = vadd.f32 %v567_v22, %v560_v23 }
 0x187   :  { %v772_v2 = vpop.f32.mrf.mxu2 }
 0x188   :  { %v773_v5 = vadd.f32 %v772_v2, %v746_v1 }
 0x189   :  { %v576_v27 = vpop.permute.xlu1 %575  ;;  %v673_v3 = vpop.permute.xlu2 %672 }
 0x18a   :  { %v578_v28 = vadd.f32 %v576_v27, %v569_v26  ;;  %v594_v30 = vpop.permute.xlu0 %593  ;;  %vm775_vm10 = vcmp.gt.f32.partialorder %v773_v5, 0.0  ;;  %v777_v6 = vmul.f32 %v776_v4, %v773_v5 }
 0x18c   :  { %v587_v31 = vadd.f32 %v585_v24, %v578_v28  ;;  %v778_v7 = vsel %vm775_vm10, %v773_v5, %v777_v6 }
 0x18d   :  { %1044 = vmatmul.msk.f32.vlgmr.msra.gmra.mxu3 %vm747_vm5, %v778_v7 }
 0x18e   :  { %v596_v32 = vadd.f32 %v594_v30, %v587_v31 }
 0x190   :  { %v603_v35 = vadd.f32 %v601_v33, %v596_v32  ;;  %v827_v32 = vld [vmem:[%s1737_s10] sm:$0xff] }
 0x191   :  { %v610_v36 = vpop.permute.xlu1 %609  ;;  %884 = vmatpush.msrb.mxu3 %v827_v32 }
 0x192   :  { %v612_v37 = vadd.f32 %v610_v36, %v603_v35  ;;  %v628_v39 = vpop.permute.xlu0 %627  ;;  %v897_v35 = vld [vmem:[%s1740_s13 + $0x10] sm:$0x3]  ;;  %v896_v36 = vld [vmem:[%s1740_s13 + $0x8] sm:$0xff] }
 0x193   :  { %1050 = vmatpush.msk.msra.mxu2 %vm751_vm3, %v897_v35 }
 0x194   :  { %v621_v38 = vadd.f32 %v619_v34, %v612_v37  ;;  %v895_v37 = vld [vmem:[%s1740_s13] sm:$0xff] }
 0x195   :  { %920 = vmatpush.msra.mxu2 %v896_v36 }
 0x196   :  { %v630_v40 = vadd.f32 %v628_v39, %v621_v38  ;;  %v932_v38 = vld [vmem:[%s1742_s15 + $0x10] sm:$0x3] }
 0x197   :  { %1052 = vmatpush.msk.msra.mxu3 %vm751_vm3, %v932_v38  ;;  %921 = vmatpush.msra.mxu2 %v895_v37 }
 0x199   :  { %v637_v42 = vpop.permute.xlu1 %636 }
 0x19a   :  { %v639_v43 = vadd.f32 %v637_v42, %v630_v40  ;;  %v655_v45 = vpop.permute.xlu0 %654 }
 0x19c   :  { %v648_v44 = vadd.f32 %v646_v41, %v639_v43  ;;  %v889_v41 = vld [vmem:[%s1739_s12] sm:$0x1]  ;;  %v892_v43 = vstv %s1037_s24 }
 0x19e   :  { %v657_v46 = vadd.f32 %v655_v45, %v648_v44 }
 0x1a1   :  { %v664_v47 = vpop.permute.xlu1 %663 }
 0x1a2   :  { %v666_v48 = vadd.f32 %v664_v47, %v657_v46  ;;  %v931_v47 = vld [vmem:[%s1742_s15 + $0x8] sm:$0xff] }
 0x1a3   :  { %954 = vmatpush.msra.mxu3 %v931_v47 }
 0x1a4   :  { %v675_v49 = vadd.f32 %v673_v3, %v666_v48  ;;  %v930_v48 = vld [vmem:[%s1742_s15] sm:$0xff] }
 0x1a5   :  { %955 = vmatpush.msra.mxu3 %v930_v48  ;;  %v898_v3 = vld [vmem:[%s1741_s14] sm:$0x1]  ;;  %s1145_s14 = smov [#allocation8]  }
 0x1a6   :  { %v1035_v50 = vmul.f32 -1.442695, %v675_v49  ;;  %s986_s15 = sshll.u32 %s1145_s14, 4  ;;  %s987_s15 = int_to_ptr.vmem [resolvable:$true] %s986_s15 }
 0x1a8   :  { %1068 = vpow2.f32 %v1035_v50  ;;  %v927_v50 = vstv %s1038_s4 }
 0x1ae   :  { %v1069_v51 = vpop.eup %1068 }
 0x1af   :  { %v679_v52 = vadd.f32 1.0, %v1069_v51 }
 0x1b1   :  { %1070 = vrcp.f32 %v679_v52  ;;  %v691_v56 = vand.u32 2147483648, %v679_v52  ;;  %v689_v58 = vand.u32 2147483647, %v679_v52  ;;  %vm685_vm7 = vweird.f32 %v679_v52 }
 0x1b3   :  { %v692_v62 = vor.u32 1.1754944e-38, %v691_v56  ;;  %vm690_vm9 = vcmp.eq.f32.partialorder %v689_v58, 8.507059e+37 }
 0x1b7   :  { %v1071_v53 = vpop.eup %1070 }
 0x1b8   :  { %v681_v54 = vmul.f32 %v1071_v53, %v679_v52  ;;  %vm686_vm6 = vweird.f32 %v1071_v53 }
 0x1b9   :  { %vm687_vm8 = vmor %vm685_vm7, %vm686_vm6 }
 0x1ba   :  { %v682_v55 = vsub.f32 1.0, %v681_v54  ;;  %v933_v54 = vld [vmem:[%s1743_s16] sm:$0x1]  ;;  %s988_s16 = sshll.u32 %s1747_s20, 4  ;;  %s989_s16 = int_to_ptr.hbm [resolvable:$true] %s988_s16 }
 0x1bc   :  { %v683_v57 = vmul.f32 %v1071_v53, %v682_v55 }
 0x1be   :  { %v684_v61 = vadd.f32 %v1071_v53, %v683_v57 }
 0x1c0   :  { %v688_v63 = vsel %vm687_vm8, %v1071_v53, %v684_v61  ;;  %vm979_vm8 = vcmask 24576  }
 0x1c1   :  { %v693_v0 = vsel %vm690_vm9, %v692_v62, %v688_v63 }
 0x1c2   :  { %696 = vrot.lane.b32.xlu0 %v693_v0, %s1139_s26 }
 0x210   :  { %v805_v15 = vpop.f32.mrf.mxu3 }
 0x211   :  { %v806_v16 = vadd.f32 %v805_v15, %v781_v12 }
 0x213   :  { %v1045_v18 = vmul.f32 -1.442695, %v806_v16 }
 0x215   :  { %1072 = vpow2.f32 %v1045_v18 }
 0x21b   :  { %v1073_v20 = vpop.eup %1072 }
 0x21c   :  { %v811_v21 = vadd.f32 1.0, %v1073_v20 }
 0x21e   :  { %1074 = vrcp.f32 %v811_v21  ;;  %v823_v24 = vand.u32 2147483648, %v811_v21  ;;  %vm817_vm12 = vweird.f32 %v811_v21  ;;  %v821_v26 = vand.u32 2147483647, %v811_v21 }
 0x220   :  { %v824_v28 = vor.u32 1.1754944e-38, %v823_v24  ;;  %vm822_vm15 = vcmp.eq.f32.partialorder %v821_v26, 8.507059e+37 }
 0x224   :  { %v1075_v22 = vpop.eup %1074 }
 0x225   :  { %v813_v23 = vmul.f32 %v1075_v22, %v811_v21  ;;  %vm818_vm13 = vweird.f32 %v1075_v22 }
 0x226   :  { %vm819_vm14 = vmor %vm817_vm12, %vm818_vm13 }
 0x227   :  { %v814_v25 = vsub.f32 1.0, %v813_v23 }
 0x229   :  { %v815_v27 = vmul.f32 %v1075_v22, %v814_v25 }
 0x22b   :  { %v816_v29 = vadd.f32 %v1075_v22, %v815_v27 }
 0x22d   :  { %v820_v30 = vsel %vm819_vm14, %v1075_v22, %v816_v29 }
 0x22e   :  { %v825_v31 = vsel %vm822_vm15, %v824_v28, %v820_v30 }
 0x22f   :  { %1047 = vmatmul.msk.f32.vlgmr.msrb.gmra.mxu2 %vm834_vm0, %v825_v31 }
 0x234   :  { %v697_v8 = vpop.permute.xlu0 %696 }
 0x235   :  { %v699_v9 = vmax.f32 %v693_v0, %v697_v8 }
 0x237   :  { %701 = vrot.lane.b32.xlu1 %v699_v9, %s1141_s19 }
 0x2a9   :  { %v702_v33 = vpop.permute.xlu1 %701 }
 0x2aa   :  { %v704_v34 = vmax.f32 %v699_v9, %v702_v33 }
 0x2ac   :  { %1049 = vmatmul.msk.f32.vlgmr.msrb.gmra.mxu3 %vm862_vm1, %v704_v34 }
 0x2b2   :  { %v859_v39 = vpop.f32.mrf.mxu2 }
 0x32f   :  { %v886_v40 = vpop.f32.mrf.mxu3 }
 0x330   :  { %v887_v42 = vadd.f32 %v886_v40, %v859_v39 }
 0x332   :  { %v890_v44 = vadd.f32 %v889_v41, %v887_v42 }
 0x334   :  { %vm891_vm2 = vcmp.gt.f32.partialorder %v890_v44, 0.0  ;;  %v893_v45 = vmul.f32 %v892_v43, %v890_v44 }
 0x336   :  { %v894_v46 = vsel %vm891_vm2, %v890_v44, %v893_v45 }
 0x337   :  { %1051 = vmatmul.msk.f32.vlgmr.msra.gmra.mxu2 %vm899_vm4, %v894_v46 }
 0x3ba   :  { %v923_v49 = vpop.f32.mrf.mxu2 }
 0x3bb   :  { %v924_v51 = vadd.f32 %v923_v49, %v898_v3 }
 0x3bd   :  { %vm926_vm3 = vcmp.gt.f32.partialorder %v924_v51, 0.0  ;;  %v928_v52 = vmul.f32 %v927_v50, %v924_v51 }
 0x3bf   :  { %v929_v53 = vsel %vm926_vm3, %v924_v51, %v928_v52 }
 0x3c0   :  { %1053 = vmatmul.msk.f32.vlgmr.msra.gmra.mxu3 %vm899_vm4, %v929_v53 }
 0x443   :  { %v957_v55 = vpop.f32.mrf.mxu3 }
 0x444   :  { %v958_v56 = vadd.f32 %v957_v55, %v933_v54 }
 0x446   :  { %v1054_v57 = vmul.f32 -1.442695, %v958_v56 }
 0x448   :  { %1076 = vpow2.f32 %v1054_v57 }
 0x44e   :  { %v1077_v58 = vpop.eup %1076 }
 0x44f   :  { %v963_v59 = vadd.f32 1.0, %v1077_v58 }
 0x451   :  { %1078 = vrcp.f32 %v963_v59  ;;  %v975_v63 = vand.u32 2147483648, %v963_v59  ;;  %v973_v1 = vand.u32 2147483647, %v963_v59  ;;  %vm969_vm6 = vweird.f32 %v963_v59 }
 0x453   :  { %v976_v4 = vor.u32 1.1754944e-38, %v975_v63  ;;  %vm974_vm9 = vcmp.eq.f32.partialorder %v973_v1, 8.507059e+37 }
 0x457   :  { %v1079_v60 = vpop.eup %1078 }
 0x458   :  { %v965_v61 = vmul.f32 %v1079_v60, %v963_v59  ;;  %vm970_vm5 = vweird.f32 %v1079_v60 }
 0x459   :  { %vm971_vm7 = vmor %vm969_vm6, %vm970_vm5 }
 0x45a   :  { %v966_v62 = vsub.f32 1.0, %v965_v61 }
 0x45c   :  { %v967_v0 = vmul.f32 %v1079_v60, %v966_v62 }
 0x45e   :  { %v968_v2 = vadd.f32 %v1079_v60, %v967_v0 }
 0x460   :  { %v972_v5 = vsel %vm971_vm7, %v1079_v60, %v968_v2 }
 0x461   :  { %v977_v6 = vsel %vm974_vm9, %v976_v4, %v972_v5 }
 0x462   :  { %980 = vst.msk [vmem:[#allocation8] sm:$0x1] %vm979_vm8, %v977_v6 }
 0x463   :  { %991 = dma.vmem_to_hbm [thread:$0]  %s987_s15, 16, %s989_s16, [#allocation4]  }
 0x464   :  { %1132 = dma.done.wait [#allocation4], 16  }
 0x465   :  { %1133 = vsyncadd [#allocation4], 4294967280 }
 0x466   :  { %996 = vsyncpa [#allocation4], 1 }
 0x467   :  { %997 = vsyncpa [#allocation5], 1 }
 0x468   :  { %998 = vsyncpa [#allocation7], 1 }

</bundles_post_ra>
